<compile_context>
chip_gen: v5e
topology: v5e:2x2
jax: 0.10.0
libtpu: 0.0.40
codegen_flags: <defaults>
</compile_context>

<pallas_src>
import functools

import jax
import jax.numpy as jnp
from jax.experimental import pallas as pl
from jax.experimental.pallas import tpu as pltpu

_LANE = 128
_SUBLANE = 8
_MAX_BATCH_TILE = 512


def _round_up(x, m):
    return (x + m - 1) // m * m


def _mlp_softmax_kernel(num_classes,
                        x_ref,
                        w1_ref, b1_ref,
                        w2_ref, b2_ref,
                        w3_ref, b3_ref,
                        w4_ref, b4_ref,
                        o_ref):
    """Fused 4-layer MLP + softmax on one (TB, F) batch tile.

    Matmuls in bf16 with f32 accumulation; bias/ReLU/softmax in f32.
    """
    x = x_ref[...]  # bf16 (TB, F_pad)

    h = jnp.dot(x, w1_ref[...], preferred_element_type=jnp.float32) + b1_ref[...]
    h = jnp.maximum(h, 0.0).astype(jnp.bfloat16)          # ReLU (Dropout = identity)

    h = jnp.dot(h, w2_ref[...], preferred_element_type=jnp.float32) + b2_ref[...]
    h = jnp.maximum(h, 0.0).astype(jnp.bfloat16)

    h = jnp.dot(h, w3_ref[...], preferred_element_type=jnp.float32) + b3_ref[...]
    h = jnp.maximum(h, 0.0).astype(jnp.bfloat16)

    logits = jnp.dot(h, w4_ref[...], preferred_element_type=jnp.float32) + b4_ref[...]

    # Mask the zero-padded class lanes so they don't contribute to softmax.
    col = jax.lax.broadcasted_iota(jnp.int32, logits.shape, 1)
    logits = jnp.where(col < num_classes, logits, -jnp.inf)

    # Numerically stable softmax over classes; divide via EUP reciprocal.
    m = jnp.max(logits, axis=1, keepdims=True)
    e = jnp.exp(logits - m)
    denom = jnp.sum(e, axis=1, keepdims=True)
    o_ref[...] = e * pl.reciprocal(denom, approx=True)


@jax.jit
def model_forward(x_nchw, params):
    """x_nchw: (B, C, H, W) float32. Returns (B, num_classes) softmax probs."""
    w1, b1, w2, b2, w3, b3, w4, b4 = params
    B = x_nchw.shape[0]
    num_classes = w4.shape[1]
    H1, H2, H3 = w1.shape[1], w2.shape[1], w3.shape[1]   # 512, 256, 128

    # nn.Flatten(): row-major flatten of (C, H, W) per example.
    x2d = x_nchw.reshape(B, -1).astype(jnp.float32)
    F = x2d.shape[1]

    # Padded, lane/sublane-aligned sizes.
    F_pad = _round_up(F, _LANE)
    C_pad = _round_up(num_classes, _LANE)
    TB = _MAX_BATCH_TILE if B >= _MAX_BATCH_TILE else _round_up(B, _SUBLANE)
    B_pad = _round_up(B, TB)

    # Zero-pad input rows/features (no garbage in partial tiles) and cast to bf16.
    x_p = (jnp.zeros((B_pad, F_pad), jnp.float32)
           .at[:B, :F].set(x2d)
           .astype(jnp.bfloat16))

    # bf16 weights (padded where needed); biases stay f32 and are added post-accum.
    w1p = (jnp.zeros((F_pad, H1), jnp.float32).at[:F, :].set(w1)
           .astype(jnp.bfloat16))
    w2p = w2.astype(jnp.bfloat16)
    w3p = w3.astype(jnp.bfloat16)
    w4p = (jnp.zeros((H3, C_pad), jnp.float32).at[:, :num_classes].set(w4)
           .astype(jnp.bfloat16))
    b4p = jnp.zeros((1, C_pad), jnp.float32).at[:, :num_classes].set(b4)

    grid = (B_pad // TB,)

    def pinned(shape):
        # Weight/bias blocks: same block for every grid step -> stay VMEM-resident.
        return pl.BlockSpec(shape, lambda i: (0, 0))

    out_p = pl.pallas_call(
        functools.partial(_mlp_softmax_kernel, num_classes),
        out_shape=jax.ShapeDtypeStruct((B_pad, C_pad), jnp.float32),
        grid=grid,
        in_specs=[
            pl.BlockSpec((TB, F_pad), lambda i: (i, 0)),   # x tile, pipelined
            pinned((F_pad, H1)), pinned((1, H1)),
            pinned((H1, H2)),    pinned((1, H2)),
            pinned((H2, H3)),    pinned((1, H3)),
            pinned((H3, C_pad)), pinned((1, C_pad)),
        ],
        out_specs=pl.BlockSpec((TB, C_pad), lambda i: (i, 0)),
        compiler_params=pltpu.CompilerParams(
            dimension_semantics=("parallel",)),   # shard batch tiles across TCs (v7x)
    )(x_p, w1p, b1, w2p, b2, w3p, b3, w4p, b4p)

    return out_p[:B, :num_classes]


def init_params(key, in_features, num_classes):
    """PyTorch-like nn.Linear init: U(-1/sqrt(fan_in), +1/sqrt(fan_in)).

    Weights are stored transposed relative to PyTorch (as (in, out)) so the
    kernel computes x @ W + b directly. Biases are (1, out) for broadcasting.
    """
    dims = [in_features, 512, 256, 128, num_classes]
    params = []
    for i in range(4):
        fan_in, fan_out = dims[i], dims[i + 1]
        key, kw, kb = jax.random.split(key, 3)
        bound = 1.0 / (fan_in ** 0.5)
        w = jax.random.uniform(kw, (fan_in, fan_out), jnp.float32, -bound, bound)
        b = jax.random.uniform(kb, (1, fan_out), jnp.float32, -bound, bound)
        params += [w, b]
    return tuple(params)


def reference_forward(x_nchw, params):
    """Pure-JAX f32 reference (exact PyTorch eval-mode semantics)."""
    w1, b1, w2, b2, w3, b3, w4, b4 = params
    h = x_nchw.reshape(x_nchw.shape[0], -1).astype(jnp.float32)
    h = jnp.maximum(h @ w1 + b1, 0.0)
    h = jnp.maximum(h @ w2 + b2, 0.0)
    h = jnp.maximum(h @ w3 + b3, 0.0)
    logits = h @ w4 + b4
    return jax.nn.softmax(logits, axis=1)


if __name__ == "__main__":
    # Small shapes consistent with the module: batch=2, channels=4, 16x16 spatial.
    B, C, H, W = 2, 4, 16, 16
    NUM_CLASSES = 10

    key = jax.random.PRNGKey(0)
    key, kx = jax.random.split(key)
    x = jax.random.normal(kx, (B, C, H, W), jnp.float32)

    params = init_params(jax.random.PRNGKey(0), C * H * W, NUM_CLASSES)

    out = model_forward(x, params)
    out = jax.block_until_ready(out)

    ref = reference_forward(x, params)
    assert out.shape == (B, NUM_CLASSES)
    assert not bool(jnp.any(jnp.isnan(out))), "NaNs in kernel output"
    # bf16 matmuls + approx reciprocal -> compare with relaxed tolerance.
    assert jnp.allclose(out, ref, atol=2e-2, rtol=2e-2), "mismatch vs f32 reference"
    assert jnp.allclose(jnp.sum(out, axis=1), 1.0, atol=1e-2), "softmax rows must sum to ~1"

    print("KERNEL_OK")
</pallas_src>

<mosaic_0001>
module attributes {stable_mosaic.version = 11 : i64} {
  func.func @_mlp_softmax_kernel(%arg0: i32, %arg1: memref<8x1024xbf16, #tpu.memory_space<vmem>>, %arg2: memref<1024x512xbf16, #tpu.memory_space<vmem>>, %arg3: memref<1x512xf32, #tpu.memory_space<vmem>>, %arg4: memref<512x256xbf16, #tpu.memory_space<vmem>>, %arg5: memref<1x256xf32, #tpu.memory_space<vmem>>, %arg6: memref<256x128xbf16, #tpu.memory_space<vmem>>, %arg7: memref<1x128xf32, #tpu.memory_space<vmem>>, %arg8: memref<128x128xbf16, #tpu.memory_space<vmem>>, %arg9: memref<1x128xf32, #tpu.memory_space<vmem>>, %arg10: memref<8x128xf32, #tpu.memory_space<vmem>>) attributes {dimension_semantics = [#tpu.dimension_semantics<parallel>], iteration_bounds = array<i64: 1>, scalar_prefetch = 0 : i64, scratch_operands = 0 : i64, tpu.core_type = #tpu.core_type<tc>, window_params = [{transform_indices = @transform_0, window_bounds = array<i64: 8, 1024>}, {pipeline_mode = #tpu.pipeline_mode<synchronous>, transform_indices = @transform_1, window_bounds = array<i64: 1024, 512>}, {pipeline_mode = #tpu.pipeline_mode<synchronous>, transform_indices = @transform_2, window_bounds = array<i64: 1, 512>}, {pipeline_mode = #tpu.pipeline_mode<synchronous>, transform_indices = @transform_3, window_bounds = array<i64: 512, 256>}, {pipeline_mode = #tpu.pipeline_mode<synchronous>, transform_indices = @transform_4, window_bounds = array<i64: 1, 256>}, {pipeline_mode = #tpu.pipeline_mode<synchronous>, transform_indices = @transform_5, window_bounds = array<i64: 256, 128>}, {pipeline_mode = #tpu.pipeline_mode<synchronous>, transform_indices = @transform_6, window_bounds = array<i64: 1, 128>}, {pipeline_mode = #tpu.pipeline_mode<synchronous>, transform_indices = @transform_7, window_bounds = array<i64: 128, 128>}, {pipeline_mode = #tpu.pipeline_mode<synchronous>, transform_indices = @transform_8, window_bounds = array<i64: 1, 128>}, {transform_indices = @transform_9, window_bounds = array<i64: 8, 128>}]} {
    %c0 = arith.constant 0 : index
    %c0_0 = arith.constant 0 : index
    %0 = vector.load %arg1[%c0, %c0_0] : memref<8x1024xbf16, #tpu.memory_space<vmem>>, vector<8x1024xbf16>
    %c0_1 = arith.constant 0 : index
    %c0_2 = arith.constant 0 : index
    %1 = vector.load %arg2[%c0_1, %c0_2] : memref<1024x512xbf16, #tpu.memory_space<vmem>>, vector<1024x512xbf16>
    %cst = arith.constant dense<0.000000e+00> : vector<8x512xf32>
    %2 = tpu.matmul %0, %1, %cst {dimension_numbers = #tpu.dot_dimension_numbers<[1], [0], [0], [1], [0, 0, 1, 1], [], []>} : vector<8x1024xbf16>, vector<1024x512xbf16>, vector<8x512xf32> -> vector<8x512xf32>
    %c0_3 = arith.constant 0 : index
    %c0_4 = arith.constant 0 : index
    %3 = vector.load %arg3[%c0_3, %c0_4] : memref<1x512xf32, #tpu.memory_space<vmem>>, vector<1x512xf32>
    %4 = vector.broadcast %3 : vector<1x512xf32> to vector<8x512xf32>
    %5 = arith.addf %2, %4 : vector<8x512xf32>
    %cst_5 = arith.constant 0.000000e+00 : f32
    %6 = vector.broadcast %cst_5 : f32 to vector<8x512xf32>
    %7 = arith.maximumf %5, %6 : vector<8x512xf32>
    %8 = arith.truncf %7 : vector<8x512xf32> to vector<8x512xbf16>
    %c0_6 = arith.constant 0 : index
    %c0_7 = arith.constant 0 : index
    %9 = vector.load %arg4[%c0_6, %c0_7] : memref<512x256xbf16, #tpu.memory_space<vmem>>, vector<512x256xbf16>
    %cst_8 = arith.constant dense<0.000000e+00> : vector<8x256xf32>
    %10 = tpu.matmul %8, %9, %cst_8 {dimension_numbers = #tpu.dot_dimension_numbers<[1], [0], [0], [1], [0, 0, 1, 1], [], []>} : vector<8x512xbf16>, vector<512x256xbf16>, vector<8x256xf32> -> vector<8x256xf32>
    %c0_9 = arith.constant 0 : index
    %c0_10 = arith.constant 0 : index
    %11 = vector.load %arg5[%c0_9, %c0_10] : memref<1x256xf32, #tpu.memory_space<vmem>>, vector<1x256xf32>
    %12 = vector.broadcast %11 : vector<1x256xf32> to vector<8x256xf32>
    %13 = arith.addf %10, %12 : vector<8x256xf32>
    %cst_11 = arith.constant 0.000000e+00 : f32
    %14 = vector.broadcast %cst_11 : f32 to vector<8x256xf32>
    %15 = arith.maximumf %13, %14 : vector<8x256xf32>
    %16 = arith.truncf %15 : vector<8x256xf32> to vector<8x256xbf16>
    %c0_12 = arith.constant 0 : index
    %c0_13 = arith.constant 0 : index
    %17 = vector.load %arg6[%c0_12, %c0_13] : memref<256x128xbf16, #tpu.memory_space<vmem>>, vector<256x128xbf16>
    %cst_14 = arith.constant dense<0.000000e+00> : vector<8x128xf32>
    %18 = tpu.matmul %16, %17, %cst_14 {dimension_numbers = #tpu.dot_dimension_numbers<[1], [0], [0], [1], [0, 0, 1, 1], [], []>} : vector<8x256xbf16>, vector<256x128xbf16>, vector<8x128xf32> -> vector<8x128xf32>
    %c0_15 = arith.constant 0 : index
    %c0_16 = arith.constant 0 : index
    %19 = vector.load %arg7[%c0_15, %c0_16] : memref<1x128xf32, #tpu.memory_space<vmem>>, vector<1x128xf32>
    %20 = vector.broadcast %19 : vector<1x128xf32> to vector<8x128xf32>
    %21 = arith.addf %18, %20 : vector<8x128xf32>
    %cst_17 = arith.constant 0.000000e+00 : f32
    %22 = vector.broadcast %cst_17 : f32 to vector<8x128xf32>
    %23 = arith.maximumf %21, %22 : vector<8x128xf32>
    %24 = arith.truncf %23 : vector<8x128xf32> to vector<8x128xbf16>
    %c0_18 = arith.constant 0 : index
    %c0_19 = arith.constant 0 : index
    %25 = vector.load %arg8[%c0_18, %c0_19] : memref<128x128xbf16, #tpu.memory_space<vmem>>, vector<128x128xbf16>
    %cst_20 = arith.constant dense<0.000000e+00> : vector<8x128xf32>
    %26 = tpu.matmul %24, %25, %cst_20 {dimension_numbers = #tpu.dot_dimension_numbers<[1], [0], [0], [1], [0, 0, 1, 1], [], []>} : vector<8x128xbf16>, vector<128x128xbf16>, vector<8x128xf32> -> vector<8x128xf32>
    %c0_21 = arith.constant 0 : index
    %c0_22 = arith.constant 0 : index
    %27 = vector.load %arg9[%c0_21, %c0_22] : memref<1x128xf32, #tpu.memory_space<vmem>>, vector<1x128xf32>
    %28 = vector.broadcast %27 : vector<1x128xf32> to vector<8x128xf32>
    %29 = arith.addf %26, %28 : vector<8x128xf32>
    %30 = tpu.iota {dimensions = array<i32: 1>} : vector<8x128xi32>
    %c10_i32 = arith.constant 10 : i32
    %31 = vector.broadcast %c10_i32 : i32 to vector<8x128xi32>
    %32 = arith.cmpi slt, %30, %31 : vector<8x128xi32>
    %cst_23 = arith.constant 0xFF800000 : f32
    %33 = vector.broadcast %cst_23 : f32 to vector<8x128xf32>
    %34 = arith.select %32, %29, %33 : vector<8x128xi1>, vector<8x128xf32>
    %cst_24 = arith.constant dense<0xFF800000> : vector<8xf32>
    %35 = vector.multi_reduction <maximumf>, %34, %cst_24 [1] : vector<8x128xf32> to vector<8xf32>
    %36 = vector.shape_cast %35 : vector<8xf32> to vector<8x1xf32>
    %37 = vector.broadcast %36 : vector<8x1xf32> to vector<8x128xf32>
    %38 = arith.subf %34, %37 : vector<8x128xf32>
    %39 = math.exp %38 : vector<8x128xf32>
    %cst_25 = arith.constant dense<0.000000e+00> : vector<8xf32>
    %40 = vector.multi_reduction <add>, %39, %cst_25 [1] : vector<8x128xf32> to vector<8xf32>
    %41 = vector.shape_cast %40 : vector<8xf32> to vector<8x1xf32>
    %42 = tpu.reciprocal %41 {approx = true} : vector<8x1xf32> -> vector<8x1xf32>
    %43 = vector.broadcast %42 : vector<8x1xf32> to vector<8x128xf32>
    %44 = arith.mulf %39, %43 : vector<8x128xf32>
    %c0_26 = arith.constant 0 : index
    %c0_27 = arith.constant 0 : index
    %45 = vector.load %arg10[%c0_26, %c0_27] : memref<8x128xf32, #tpu.memory_space<vmem>>, vector<8x128xf32>
    tpu.vector_store %arg10[%c0_26, %c0_27], %44 {strides = array<i32>} : memref<8x128xf32, #tpu.memory_space<vmem>>, vector<8x128xf32>,
    return
  }
  func.func @transform_0(%arg0: i32) -> (i32, i32) {
    %c0_i32 = arith.constant 0 : i32
    %c0_i32_0 = arith.constant 0 : i32
    return %arg0, %c0_i32 : i32, i32
  }
  func.func @transform_1(%arg0: i32) -> (i32, i32) {
    %c0_i32 = arith.constant 0 : i32
    %c0_i32_0 = arith.constant 0 : i32
    %c0_i32_1 = arith.constant 0 : i32
    return %c0_i32, %c0_i32_0 : i32, i32
  }
  func.func @transform_2(%arg0: i32) -> (i32, i32) {
    %c0_i32 = arith.constant 0 : i32
    %c0_i32_0 = arith.constant 0 : i32
    %c0_i32_1 = arith.constant 0 : i32
    return %c0_i32, %c0_i32_0 : i32, i32
  }
  func.func @transform_3(%arg0: i32) -> (i32, i32) {
    %c0_i32 = arith.constant 0 : i32
    %c0_i32_0 = arith.constant 0 : i32
    %c0_i32_1 = arith.constant 0 : i32
    return %c0_i32, %c0_i32_0 : i32, i32
  }
  func.func @transform_4(%arg0: i32) -> (i32, i32) {
    %c0_i32 = arith.constant 0 : i32
    %c0_i32_0 = arith.constant 0 : i32
    %c0_i32_1 = arith.constant 0 : i32
    return %c0_i32, %c0_i32_0 : i32, i32
  }
  func.func @transform_5(%arg0: i32) -> (i32, i32) {
    %c0_i32 = arith.constant 0 : i32
    %c0_i32_0 = arith.constant 0 : i32
    %c0_i32_1 = arith.constant 0 : i32
    return %c0_i32, %c0_i32_0 : i32, i32
  }
  func.func @transform_6(%arg0: i32) -> (i32, i32) {
    %c0_i32 = arith.constant 0 : i32
    %c0_i32_0 = arith.constant 0 : i32
    %c0_i32_1 = arith.constant 0 : i32
    return %c0_i32, %c0_i32_0 : i32, i32
  }
  func.func @transform_7(%arg0: i32) -> (i32, i32) {
    %c0_i32 = arith.constant 0 : i32
    %c0_i32_0 = arith.constant 0 : i32
    %c0_i32_1 = arith.constant 0 : i32
    return %c0_i32, %c0_i32_0 : i32, i32
  }
  func.func @transform_8(%arg0: i32) -> (i32, i32) {
    %c0_i32 = arith.constant 0 : i32
    %c0_i32_0 = arith.constant 0 : i32
    %c0_i32_1 = arith.constant 0 : i32
    return %c0_i32, %c0_i32_0 : i32, i32
  }
  func.func @transform_9(%arg0: i32) -> (i32, i32) {
    %c0_i32 = arith.constant 0 : i32
    %c0_i32_0 = arith.constant 0 : i32
    return %arg0, %c0_i32 : i32, i32
  }
}

</mosaic_0001>

<bundles_post_ra>
// kernel: model_forward.1
= control target key start
LH: loop header
LB: loop body
LE: loop exit
PB: predicated region body
PF: predicated region fallthrough
CT: control target
= control target key end

     0   :  { %s6675_s1 = inlined_call_operand.vmem [shape: bf16[1024,512], index: 1, kind: input, shape index: {}]   ;;  %s6676_s0 = inlined_call_operand.vmem [shape: bf16[8,1024], index: 0, kind: input, shape index: {}]   ;;  %s6677_s2 = inlined_call_operand.vmem [shape: f32[1,512], index: 2, kind: input, shape index: {}]   ;;  %s6678_s3 = inlined_call_operand.vmem [shape: bf16[512,256], index: 3, kind: input, shape index: {}]   ;;  %s6679_s4 = inlined_call_operand.vmem [shape: f32[1,256], index: 4, kind: input, shape index: {}]   ;;  %s6680_s6 = inlined_call_operand.vmem [shape: f32[1,128], index: 6, kind: input, shape index: {}]   ;;  %s6681_s5 = inlined_call_operand.vmem [shape: bf16[256,128], index: 5, kind: input, shape index: {}]   ;;  %s6682_s7 = inlined_call_operand.vmem [shape: bf16[128,128], index: 7, kind: input, shape index: {}]   ;;  %s6683_s8 = inlined_call_operand.vmem [shape: f32[1,128], index: 8, kind: input, shape index: {}]   ;;  %s6684_s9 = inlined_call_operand.vmem [shape: f32[8,128], index: 9, kind: output, shape index: {}]  }
   0x1   :  { %v2905_v0 = vld [vmem:[%s6675_s1 + $0xe0] sm:$0xf]  ;;  %v4197_v1 = vld [vmem:[%s6675_s1 + $0xec] sm:$0xf0] }
   0x2   :  { %v3033_v2 = vld [vmem:[%s6675_s1 + $0x1e0] sm:$0xf]  ;;  %v2906_v3 = vor.u32 %v4197_v1, %v2905_v0  ;;  %v4229_v4 = vld [vmem:[%s6675_s1 + $0x1ec] sm:$0xf0] }
   0x3   :  { %v3161_v5 = vld [vmem:[%s6675_s1 + $0x2e0] sm:$0xf]  ;;  %v4261_v6 = vld [vmem:[%s6675_s1 + $0x2ec] sm:$0xf0]  ;;  %v3034_v7 = vor.u32 %v4229_v4, %v3033_v2 }
   0x4   :  { %v3162_v8 = vor.u32 %v4261_v6, %v3161_v5  ;;  %v3289_v9 = vld [vmem:[%s6675_s1 + $0x3e0] sm:$0xf]  ;;  %v4293_v10 = vld [vmem:[%s6675_s1 + $0x3ec] sm:$0xf0]  ;;  %1610 = vmatpush.bf16.msra.mxu0 %v2906_v3 }
   0x5   :  { %v2889_v11 = vld [vmem:[%s6675_s1 + $0xc0] sm:$0xf]  ;;  %v3290_v12 = vor.u32 %v4293_v10, %v3289_v9  ;;  %v4193_v13 = vld [vmem:[%s6675_s1 + $0xcc] sm:$0xf0]  ;;  %1623 = vmatpush.bf16.msra.mxu1 %v3034_v7 }
   0x6   :  { %v3017_v14 = vld [vmem:[%s6675_s1 + $0x1c0] sm:$0xf]  ;;  %v4225_v15 = vld [vmem:[%s6675_s1 + $0x1cc] sm:$0xf0]  ;;  %1636 = vmatpush.bf16.msra.mxu2 %v3162_v8  ;;  %v2890_v16 = vor.u32 %v4193_v13, %v2889_v11 }
   0x7   :  { %v3018_v17 = vor.u32 %v4225_v15, %v3017_v14  ;;  %v3145_v18 = vld [vmem:[%s6675_s1 + $0x2c0] sm:$0xf]  ;;  %v4257_v19 = vld [vmem:[%s6675_s1 + $0x2cc] sm:$0xf0]  ;;  %1649 = vmatpush.bf16.msra.mxu3 %v3290_v12 }
   0x8   :  { %v3273_v20 = vld [vmem:[%s6675_s1 + $0x3c0] sm:$0xf]  ;;  %v3146_v21 = vor.u32 %v4257_v19, %v3145_v18  ;;  %v4289_v22 = vld [vmem:[%s6675_s1 + $0x3cc] sm:$0xf0]  ;;  %1611 = vmatpush.bf16.msra.mxu0 %v2890_v16 }
   0x9   :  { %v2873_v23 = vld [vmem:[%s6675_s1 + $0xa0] sm:$0xf]  ;;  %v4189_v24 = vld [vmem:[%s6675_s1 + $0xac] sm:$0xf0]  ;;  %v3274_v25 = vor.u32 %v4289_v22, %v3273_v20  ;;  %1624 = vmatpush.bf16.msra.mxu1 %v3018_v17 }
   0xa   :  { %v3001_v26 = vld [vmem:[%s6675_s1 + $0x1a0] sm:$0xf]  ;;  %v4221_v27 = vld [vmem:[%s6675_s1 + $0x1ac] sm:$0xf0]  ;;  %v2874_v29 = vor.u32 %v4189_v24, %v2873_v23  ;;  %1637 = vmatpush.bf16.msra.mxu2 %v3146_v21 }
   0xb   :  { %v3129_v28 = vld [vmem:[%s6675_s1 + $0x2a0] sm:$0xf]  ;;  %v4253_v30 = vld [vmem:[%s6675_s1 + $0x2ac] sm:$0xf0]  ;;  %v3002_v33 = vor.u32 %v4221_v27, %v3001_v26  ;;  %1650 = vmatpush.bf16.msra.mxu3 %v3274_v25 }
   0xc   :  { %v3257_v31 = vld [vmem:[%s6675_s1 + $0x3a0] sm:$0xf]  ;;  %v4285_v32 = vld [vmem:[%s6675_s1 + $0x3ac] sm:$0xf0]  ;;  %v3130_v34 = vor.u32 %v4253_v30, %v3129_v28  ;;  %1612 = vmatpush.bf16.msra.mxu0 %v2874_v29 }
   0xd   :  { %v2857_v35 = vld [vmem:[%s6675_s1 + $0x80] sm:$0xf]  ;;  %v4185_v36 = vld [vmem:[%s6675_s1 + $0x8c] sm:$0xf0]  ;;  %v3258_v38 = vor.u32 %v4285_v32, %v3257_v31  ;;  %1625 = vmatpush.bf16.msra.mxu1 %v3002_v33 }
   0xe   :  { %v2985_v37 = vld [vmem:[%s6675_s1 + $0x180] sm:$0xf]  ;;  %v4217_v39 = vld [vmem:[%s6675_s1 + $0x18c] sm:$0xf0]  ;;  %v2858_v44 = vor.u32 %v4185_v36, %v2857_v35  ;;  %1638 = vmatpush.bf16.msra.mxu2 %v3130_v34 }
   0xf   :  { %v3113_v40 = vld [vmem:[%s6675_s1 + $0x280] sm:$0xf]  ;;  %v4249_v41 = vld [vmem:[%s6675_s1 + $0x28c] sm:$0xf0]  ;;  %v2986_v45 = vor.u32 %v4217_v39, %v2985_v37  ;;  %1651 = vmatpush.bf16.msra.mxu3 %v3258_v38 }
  0x10   :  { %v3241_v42 = vld [vmem:[%s6675_s1 + $0x380] sm:$0xf]  ;;  %v4281_v43 = vld [vmem:[%s6675_s1 + $0x38c] sm:$0xf0]  ;;  %v3114_v46 = vor.u32 %v4249_v41, %v3113_v40  ;;  %1613 = vmatpush.bf16.msra.mxu0 %v2858_v44 }
  0x11   :  { %v2841_v47 = vld [vmem:[%s6675_s1 + $0x60] sm:$0xf]  ;;  %v4181_v48 = vld [vmem:[%s6675_s1 + $0x6c] sm:$0xf0]  ;;  %v3242_v50 = vor.u32 %v4281_v43, %v3241_v42  ;;  %1626 = vmatpush.bf16.msra.mxu1 %v2986_v45 }
  0x12   :  { %v2969_v49 = vld [vmem:[%s6675_s1 + $0x160] sm:$0xf]  ;;  %v4213_v51 = vld [vmem:[%s6675_s1 + $0x16c] sm:$0xf0]  ;;  %v2842_v56 = vor.u32 %v4181_v48, %v2841_v47  ;;  %1639 = vmatpush.bf16.msra.mxu2 %v3114_v46 }
  0x13   :  { %v3097_v52 = vld [vmem:[%s6675_s1 + $0x260] sm:$0xf]  ;;  %v4245_v53 = vld [vmem:[%s6675_s1 + $0x26c] sm:$0xf0]  ;;  %v2970_v57 = vor.u32 %v4213_v51, %v2969_v49  ;;  %1652 = vmatpush.bf16.msra.mxu3 %v3242_v50 }
  0x14   :  { %v3225_v54 = vld [vmem:[%s6675_s1 + $0x360] sm:$0xf]  ;;  %v4277_v55 = vld [vmem:[%s6675_s1 + $0x36c] sm:$0xf0]  ;;  %v3098_v58 = vor.u32 %v4245_v53, %v3097_v52  ;;  %1614 = vmatpush.bf16.msra.mxu0 %v2842_v56 }
  0x15   :  { %v2825_v59 = vld [vmem:[%s6675_s1 + $0x40] sm:$0xf]  ;;  %v4177_v60 = vld [vmem:[%s6675_s1 + $0x4c] sm:$0xf0]  ;;  %v3226_v62 = vor.u32 %v4277_v55, %v3225_v54  ;;  %1627 = vmatpush.bf16.msra.mxu1 %v2970_v57 }
  0x16   :  { %v2953_v61 = vld [vmem:[%s6675_s1 + $0x140] sm:$0xf]  ;;  %v4209_v63 = vld [vmem:[%s6675_s1 + $0x14c] sm:$0xf0]  ;;  %v2826_v4 = vor.u32 %v4177_v60, %v2825_v59  ;;  %1640 = vmatpush.bf16.msra.mxu2 %v3098_v58 }
  0x17   :  { %v3081_v0 = vld [vmem:[%s6675_s1 + $0x240] sm:$0xf]  ;;  %v4241_v1 = vld [vmem:[%s6675_s1 + $0x24c] sm:$0xf0]  ;;  %v2954_v5 = vor.u32 %v4209_v63, %v2953_v61  ;;  %1653 = vmatpush.bf16.msra.mxu3 %v3226_v62 }
  0x18   :  { %v3209_v2 = vld [vmem:[%s6675_s1 + $0x340] sm:$0xf]  ;;  %v4273_v3 = vld [vmem:[%s6675_s1 + $0x34c] sm:$0xf0]  ;;  %v3082_v6 = vor.u32 %v4241_v1, %v3081_v0  ;;  %1615 = vmatpush.bf16.msra.mxu0 %v2826_v4 }
  0x19   :  { %v2809_v7 = vld [vmem:[%s6675_s1 + $0x20] sm:$0xf]  ;;  %v4173_v8 = vld [vmem:[%s6675_s1 + $0x2c] sm:$0xf0]  ;;  %v3210_v10 = vor.u32 %v4273_v3, %v3209_v2  ;;  %1628 = vmatpush.bf16.msra.mxu1 %v2954_v5  ;;  %v33_v2 = vld [vmem:[%s6676_s0 + $0x8] sm:$0xff] }
  0x1a   :  { %v2937_v9 = vld [vmem:[%s6675_s1 + $0x120] sm:$0xf]  ;;  %v4205_v11 = vld [vmem:[%s6675_s1 + $0x12c] sm:$0xf0]  ;;  %v2810_v16 = vor.u32 %v4173_v8, %v2809_v7  ;;  %1641 = vmatpush.bf16.msra.mxu2 %v3082_v6  ;;  %v308_v8 = vunpack.c.l.b16 %v33_v2 }
  0x1b   :  { %v3065_v12 = vld [vmem:[%s6675_s1 + $0x220] sm:$0xf]  ;;  %v4237_v13 = vld [vmem:[%s6675_s1 + $0x22c] sm:$0xf0]  ;;  %v2938_v19 = vor.u32 %v4205_v11, %v2937_v9  ;;  %1654 = vmatpush.bf16.msra.mxu3 %v3210_v10  ;;  %v309_v10 = vunpack.c.h.b16 %v33_v2 }
  0x1c   :  { %v3193_v14 = vld [vmem:[%s6675_s1 + $0x320] sm:$0xf]  ;;  %v4269_v15 = vld [vmem:[%s6675_s1 + $0x32c] sm:$0xf0]  ;;  %v3066_v20 = vor.u32 %v4237_v13, %v3065_v12  ;;  %1616 = vmatpush.bf16.msra.mxu0 %v2810_v16 }
  0x1d   :  { %v2793_v17 = vld [vmem:[%s6675_s1] sm:$0xf]  ;;  %v4169_v18 = vld [vmem:[%s6675_s1 + $0xc] sm:$0xf0]  ;;  %v3194_v24 = vor.u32 %v4269_v15, %v3193_v14  ;;  %1629 = vmatpush.bf16.msra.mxu1 %v2938_v19 }
  0x1e   :  { %v2921_v21 = vld [vmem:[%s6675_s1 + $0x100] sm:$0xf]  ;;  %v4201_v22 = vld [vmem:[%s6675_s1 + $0x10c] sm:$0xf0]  ;;  %v2794_v31 = vor.u32 %v4169_v18, %v2793_v17  ;;  %1642 = vmatpush.bf16.msra.mxu2 %v3066_v20  ;;  %v4862_v18 = vpack.c.b16 %v308_v8, %v308_v8  ;;  %v4866_v20 = vpack.c.b16 %v309_v10, %v309_v10  ;;  %v4195_v8 = vld [vmem:[%s6675_s1 + $0xe4] sm:$0xf] }
  0x1f   :  { %v3049_v23 = vld [vmem:[%s6675_s1 + $0x200] sm:$0xf]  ;;  %v4233_v25 = vld [vmem:[%s6675_s1 + $0x20c] sm:$0xf0]  ;;  %v2922_v35 = vor.u32 %v4201_v22, %v2921_v21  ;;  %1655 = vmatpush.bf16.msra.mxu3 %v3194_v24  ;;  %v4227_v10 = vld [vmem:[%s6675_s1 + $0x1e4] sm:$0xf] }
  0x20   :  { %v3177_v26 = vld [vmem:[%s6675_s1 + $0x300] sm:$0xf]  ;;  %v4265_v27 = vld [vmem:[%s6675_s1 + $0x30c] sm:$0xf0]  ;;  %v3050_v36 = vor.u32 %v4233_v25, %v3049_v23  ;;  %1617 = vmatpush.bf16.msra.mxu0 %v2794_v31 }
  0x21   :  { %v3417_v28 = vld [vmem:[%s6675_s1 + $0x4e0] sm:$0xf]  ;;  %v4325_v29 = vld [vmem:[%s6675_s1 + $0x4ec] sm:$0xf0]  ;;  %v3178_v39 = vor.u32 %v4265_v27, %v3177_v26  ;;  %1630 = vmatpush.bf16.msra.mxu1 %v2922_v35 }
  0x22   :  { %v3545_v30 = vld [vmem:[%s6675_s1 + $0x5e0] sm:$0xf]  ;;  %v4357_v32 = vld [vmem:[%s6675_s1 + $0x5ec] sm:$0xf0]  ;;  %v3418_v40 = vor.u32 %v4325_v29, %v3417_v28  ;;  %1643 = vmatpush.bf16.msra.mxu2 %v3050_v36 }
  0x23   :  { %v3673_v33 = vld [vmem:[%s6675_s1 + $0x6e0] sm:$0xf]  ;;  %v4389_v34 = vld [vmem:[%s6675_s1 + $0x6ec] sm:$0xf0]  ;;  %v3546_v41 = vor.u32 %v4357_v32, %v3545_v30  ;;  %1656 = vmatpush.bf16.msra.mxu3 %v3178_v39 }
  0x24   :  { %v3801_v37 = vld [vmem:[%s6675_s1 + $0x7e0] sm:$0xf]  ;;  %v4421_v38 = vld [vmem:[%s6675_s1 + $0x7ec] sm:$0xf0]  ;;  %v3674_v42 = vor.u32 %v4389_v34, %v3673_v33  ;;  %1662 = vmatpush.bf16.msrb.mxu0 %v3418_v40 }
  0x25   :  { %v3401_v43 = vld [vmem:[%s6675_s1 + $0x4c0] sm:$0xf]  ;;  %v4321_v44 = vld [vmem:[%s6675_s1 + $0x4cc] sm:$0xf0]  ;;  %v3802_v46 = vor.u32 %v4421_v38, %v3801_v37  ;;  %1675 = vmatpush.bf16.msrb.mxu1 %v3546_v41  ;;  %1644 = vmatmul.bf16.vlgmr.msra.gmra.mxu2 %v4862_v18 }
  0x26   :  { %v3529_v45 = vld [vmem:[%s6675_s1 + $0x5c0] sm:$0xf]  ;;  %v4353_v47 = vld [vmem:[%s6675_s1 + $0x5cc] sm:$0xf0]  ;;  %v3402_v52 = vor.u32 %v4321_v44, %v3401_v43  ;;  %1688 = vmatpush.bf16.msrb.mxu2 %v3674_v42  ;;  %1657 = vmatmul.bf16.vlgmr.msra.gmra.mxu3 %v4866_v20 }
  0x27   :  { %v3657_v48 = vld [vmem:[%s6675_s1 + $0x6c0] sm:$0xf]  ;;  %v4385_v49 = vld [vmem:[%s6675_s1 + $0x6cc] sm:$0xf0]  ;;  %v3530_v54 = vor.u32 %v4353_v47, %v3529_v45  ;;  %1701 = vmatpush.bf16.msrb.mxu3 %v3802_v46 }
  0x28   :  { %v3785_v50 = vld [vmem:[%s6675_s1 + $0x7c0] sm:$0xf]  ;;  %v4417_v51 = vld [vmem:[%s6675_s1 + $0x7cc] sm:$0xf0]  ;;  %v3658_v55 = vor.u32 %v4385_v49, %v3657_v48  ;;  %1663 = vmatpush.bf16.msrb.mxu0 %v3402_v52 }
  0x29   :  { %v3385_v53 = vld [vmem:[%s6675_s1 + $0x4a0] sm:$0xf]  ;;  %v4317_v56 = vld [vmem:[%s6675_s1 + $0x4ac] sm:$0xf0]  ;;  %v3786_v59 = vor.u32 %v4417_v51, %v3785_v50  ;;  %1676 = vmatpush.bf16.msrb.mxu1 %v3530_v54 }
  0x2a   :  { %v3513_v57 = vld [vmem:[%s6675_s1 + $0x5a0] sm:$0xf]  ;;  %v4349_v58 = vld [vmem:[%s6675_s1 + $0x5ac] sm:$0xf0]  ;;  %v3386_v0 = vor.u32 %v4317_v56, %v3385_v53  ;;  %1689 = vmatpush.bf16.msrb.mxu2 %v3658_v55 }
  0x2b   :  { %v3641_v60 = vld [vmem:[%s6675_s1 + $0x6a0] sm:$0xf]  ;;  %v4381_v61 = vld [vmem:[%s6675_s1 + $0x6ac] sm:$0xf0]  ;;  %v3514_v1 = vor.u32 %v4349_v58, %v3513_v57  ;;  %1702 = vmatpush.bf16.msrb.mxu3 %v3786_v59 }
  0x2c   :  { %v3769_v62 = vld [vmem:[%s6675_s1 + $0x7a0] sm:$0xf]  ;;  %v4413_v63 = vld [vmem:[%s6675_s1 + $0x7ac] sm:$0xf0]  ;;  %v3642_v4 = vor.u32 %v4381_v61, %v3641_v60  ;;  %1664 = vmatpush.bf16.msrb.mxu0 %v3386_v0 }
  0x2d   :  { %v32_v3 = vld [vmem:[%s6676_s0] sm:$0xff]  ;;  %v4313_v6 = vld [vmem:[%s6675_s1 + $0x48c] sm:$0xf0]  ;;  %v3770_v11 = vor.u32 %v4413_v63, %v3769_v62  ;;  %1677 = vmatpush.bf16.msrb.mxu1 %v3514_v1 }
  0x2e   :  { %v3369_v5 = vld [vmem:[%s6675_s1 + $0x480] sm:$0xf]  ;;  %v306_v9 = vunpack.c.l.b16 %v32_v3  ;;  %v4345_v12 = vld [vmem:[%s6675_s1 + $0x58c] sm:$0xf0]  ;;  %v307_v15 = vunpack.c.h.b16 %v32_v3  ;;  %1690 = vmatpush.bf16.msrb.mxu2 %v3642_v4  ;;  %v35_v3 = vld [vmem:[%s6676_s0 + $0x18] sm:$0xff] }
  0x2f   :  { %v3497_v7 = vld [vmem:[%s6675_s1 + $0x580] sm:$0xf]  ;;  %v4377_v14 = vld [vmem:[%s6675_s1 + $0x68c] sm:$0xf0]  ;;  %v3370_v21 = vor.u32 %v4313_v6, %v3369_v5  ;;  %1703 = vmatpush.bf16.msrb.mxu3 %v3770_v11 }
  0x30   :  { %v3625_v13 = vld [vmem:[%s6675_s1 + $0x680] sm:$0xf]  ;;  %v4409_v17 = vld [vmem:[%s6675_s1 + $0x78c] sm:$0xf0]  ;;  %v4864_v19 = vpack.c.b16 %v306_v9, %v306_v9  ;;  %v4868_v22 = vpack.c.b16 %v307_v15, %v307_v15  ;;  %v3498_v23 = vor.u32 %v4345_v12, %v3497_v7  ;;  %v2907_v9 = vld [vmem:[%s6675_s1 + $0xf0] sm:$0xf0]  ;;  %v312_v15 = vunpack.c.l.b16 %v35_v3 }
  0x31   :  { %v3753_v16 = vld [vmem:[%s6675_s1 + $0x780] sm:$0xf]  ;;  %v3626_v24 = vor.u32 %v4377_v14, %v3625_v13  ;;  %v4309_v26 = vld [vmem:[%s6675_s1 + $0x46c] sm:$0xf0]  ;;  %1665 = vmatpush.bf16.msrb.mxu0 %v3370_v21  ;;  %v3035_v12 = vld [vmem:[%s6675_s1 + $0x1f0] sm:$0xf0] }
  0x32   :  { %v3353_v25 = vld [vmem:[%s6675_s1 + $0x460] sm:$0xf]  ;;  %v3754_v28 = vor.u32 %v4409_v17, %v3753_v16  ;;  %v4341_v29 = vld [vmem:[%s6675_s1 + $0x56c] sm:$0xf0]  ;;  %1618 = vmatmul.bf16.vlgmr.msra.gmra.mxu0 %v4864_v19  ;;  %1631 = vmatmul.bf16.vlgmr.msra.gmra.mxu1 %v4868_v22  ;;  %v4259_v13 = vld [vmem:[%s6675_s1 + $0x2e4] sm:$0xf] }
  0x33   :  { %v3481_v27 = vld [vmem:[%s6675_s1 + $0x560] sm:$0xf]  ;;  %v4373_v31 = vld [vmem:[%s6675_s1 + $0x66c] sm:$0xf0]  ;;  %v3354_v34 = vor.u32 %v4309_v26, %v3353_v25  ;;  %1678 = vmatpush.bf16.msrb.mxu1 %v3498_v23  ;;  %1691 = vmatpush.bf16.msrb.mxu2 %v3626_v24  ;;  %v3163_v14 = vld [vmem:[%s6675_s1 + $0x2f0] sm:$0xf0]  ;;  %v313_v25 = vunpack.c.h.b16 %v35_v3 }
  0x34   :  { %v3609_v30 = vld [vmem:[%s6675_s1 + $0x660] sm:$0xf]  ;;  %v4405_v33 = vld [vmem:[%s6675_s1 + $0x76c] sm:$0xf0]  ;;  %v3482_v35 = vor.u32 %v4341_v29, %v3481_v27  ;;  %1704 = vmatpush.bf16.msrb.mxu3 %v3754_v28  ;;  %v4291_v21 = vld [vmem:[%s6675_s1 + $0x3e4] sm:$0xf]  ;;  %v2910_v27 = vor.u32 %v4195_v8, %v2907_v9  ;;  %v3038_v29 = vor.u32 %v4227_v10, %v3035_v12 }
  0x35   :  { %v3737_v32 = vld [vmem:[%s6675_s1 + $0x760] sm:$0xf]  ;;  %v3610_v36 = vor.u32 %v4373_v31, %v3609_v30  ;;  %v4305_v38 = vld [vmem:[%s6675_s1 + $0x44c] sm:$0xf0]  ;;  %1666 = vmatpush.bf16.msrb.mxu0 %v3354_v34  ;;  %v3291_v23 = vld [vmem:[%s6675_s1 + $0x3f0] sm:$0xf0]  ;;  %v3166_v30 = vor.u32 %v4259_v13, %v3163_v14 }
  0x36   :  { %v3337_v37 = vld [vmem:[%s6675_s1 + $0x440] sm:$0xf]  ;;  %v3738_v40 = vor.u32 %v4405_v33, %v3737_v32  ;;  %v4337_v41 = vld [vmem:[%s6675_s1 + $0x54c] sm:$0xf0]  ;;  %v4191_v31 = vld [vmem:[%s6675_s1 + $0xc4] sm:$0xf]  ;;  %v3294_v34 = vor.u32 %v4291_v21, %v3291_v23 }
  0x37   :  { %v3465_v39 = vld [vmem:[%s6675_s1 + $0x540] sm:$0xf]  ;;  %v4369_v43 = vld [vmem:[%s6675_s1 + $0x64c] sm:$0xf0]  ;;  %v3338_v46 = vor.u32 %v4305_v38, %v3337_v37  ;;  %1679 = vmatpush.bf16.msrb.mxu1 %v3482_v35  ;;  %1692 = vmatpush.bf16.msrb.mxu2 %v3610_v36  ;;  %v2891_v32 = vld [vmem:[%s6675_s1 + $0xd0] sm:$0xf0]  ;;  %v5018_v38 = vpack.c.b16 %v312_v15, %v312_v15 }
  0x38   :  { %v3593_v42 = vld [vmem:[%s6675_s1 + $0x640] sm:$0xf]  ;;  %v4401_v45 = vld [vmem:[%s6675_s1 + $0x74c] sm:$0xf0]  ;;  %v3466_v47 = vor.u32 %v4337_v41, %v3465_v39  ;;  %1705 = vmatpush.bf16.msrb.mxu3 %v3738_v40  ;;  %v4223_v33 = vld [vmem:[%s6675_s1 + $0x1c4] sm:$0xf] }
  0x39   :  { %v3721_v44 = vld [vmem:[%s6675_s1 + $0x740] sm:$0xf]  ;;  %v3594_v48 = vor.u32 %v4369_v43, %v3593_v42  ;;  %v4301_v50 = vld [vmem:[%s6675_s1 + $0x42c] sm:$0xf0]  ;;  %1667 = vmatpush.bf16.msrb.mxu0 %v3338_v46  ;;  %v3019_v35 = vld [vmem:[%s6675_s1 + $0x1d0] sm:$0xf0]  ;;  %v5028_v42 = vpack.c.b16 %v313_v25, %v313_v25  ;;  %v2894_v43 = vor.u32 %v4191_v31, %v2891_v32 }
  0x3a   :  { %v3321_v49 = vld [vmem:[%s6675_s1 + $0x420] sm:$0xf]  ;;  %v3722_v52 = vor.u32 %v4401_v45, %v3721_v44  ;;  %v4333_v53 = vld [vmem:[%s6675_s1 + $0x52c] sm:$0xf0]  ;;  %v4255_v36 = vld [vmem:[%s6675_s1 + $0x2c4] sm:$0xf]  ;;  %v3022_v45 = vor.u32 %v4223_v33, %v3019_v35 }
  0x3b   :  { %v3449_v51 = vld [vmem:[%s6675_s1 + $0x520] sm:$0xf]  ;;  %v4365_v55 = vld [vmem:[%s6675_s1 + $0x62c] sm:$0xf0]  ;;  %v3322_v59 = vor.u32 %v4301_v50, %v3321_v49  ;;  %1680 = vmatpush.bf16.msrb.mxu1 %v3466_v47  ;;  %1693 = vmatpush.bf16.msrb.mxu2 %v3594_v48  ;;  %v3147_v37 = vld [vmem:[%s6675_s1 + $0x2d0] sm:$0xf0] }
  0x3c   :  { %v3577_v54 = vld [vmem:[%s6675_s1 + $0x620] sm:$0xf]  ;;  %v4397_v57 = vld [vmem:[%s6675_s1 + $0x72c] sm:$0xf0]  ;;  %v3450_v63 = vor.u32 %v4333_v53, %v3449_v51  ;;  %1706 = vmatpush.bf16.msrb.mxu3 %v3722_v52  ;;  %v4287_v39 = vld [vmem:[%s6675_s1 + $0x3c4] sm:$0xf]  ;;  %v3150_v46 = vor.u32 %v4255_v36, %v3147_v37 }
  0x3d   :  { %v3705_v56 = vld [vmem:[%s6675_s1 + $0x720] sm:$0xf]  ;;  %v4297_v60 = vld [vmem:[%s6675_s1 + $0x40c] sm:$0xf0]  ;;  %v3578_v0 = vor.u32 %v4365_v55, %v3577_v54  ;;  %1668 = vmatpush.bf16.msrb.mxu0 %v3322_v59  ;;  %v3275_v40 = vld [vmem:[%s6675_s1 + $0x3d0] sm:$0xf0] }
  0x3e   :  { %v3305_v58 = vld [vmem:[%s6675_s1 + $0x400] sm:$0xf]  ;;  %v4329_v62 = vld [vmem:[%s6675_s1 + $0x50c] sm:$0xf0]  ;;  %v3706_v4 = vor.u32 %v4397_v57, %v3705_v56  ;;  %v4187_v47 = vld [vmem:[%s6675_s1 + $0xa4] sm:$0xf]  ;;  %v3278_v50 = vor.u32 %v4287_v39, %v3275_v40 }
  0x3f   :  { %v3433_v61 = vld [vmem:[%s6675_s1 + $0x500] sm:$0xf]  ;;  %v4361_v2 = vld [vmem:[%s6675_s1 + $0x60c] sm:$0xf0]  ;;  %v3306_v11 = vor.u32 %v4297_v60, %v3305_v58  ;;  %1681 = vmatpush.bf16.msrb.mxu1 %v3450_v63  ;;  %1694 = vmatpush.bf16.msrb.mxu2 %v3578_v0  ;;  %v2875_v48 = vld [vmem:[%s6675_s1 + $0xb0] sm:$0xf0] }
  0x40   :  { %v3561_v1 = vld [vmem:[%s6675_s1 + $0x600] sm:$0xf]  ;;  %v4393_v6 = vld [vmem:[%s6675_s1 + $0x70c] sm:$0xf0]  ;;  %v3434_v16 = vor.u32 %v4329_v62, %v3433_v61  ;;  %1707 = vmatpush.bf16.msrb.mxu3 %v3706_v4  ;;  %v4219_v49 = vld [vmem:[%s6675_s1 + $0x1a4] sm:$0xf]  ;;  %v2878_v56 = vor.u32 %v4187_v47, %v2875_v48 }
  0x41   :  { %v3689_v5 = vld [vmem:[%s6675_s1 + $0x700] sm:$0xf]  ;;  %v34_v7 = vld [vmem:[%s6676_s0 + $0x10] sm:$0xff]  ;;  %v3562_v17 = vor.u32 %v4361_v2, %v3561_v1  ;;  %1669 = vmatpush.bf16.msrb.mxu0 %v3306_v11  ;;  %v4251_v52 = vld [vmem:[%s6675_s1 + $0x2a4] sm:$0xf] }
  0x42   :  { %v310_v24 = vunpack.c.l.b16 %v34_v7  ;;  %v3690_v26 = vor.u32 %v4393_v6, %v3689_v5  ;;  %v311_v28 = vunpack.c.h.b16 %v34_v7  ;;  %v3003_v51 = vld [vmem:[%s6675_s1 + $0x1b0] sm:$0xf0]  ;;  %v4283_v54 = vld [vmem:[%s6675_s1 + $0x3a4] sm:$0xf] }
  0x43   :  { %1682 = vmatpush.bf16.msrb.mxu1 %v3434_v16  ;;  %1695 = vmatpush.bf16.msrb.mxu2 %v3562_v17  ;;  %v3131_v53 = vld [vmem:[%s6675_s1 + $0x2b0] sm:$0xf0]  ;;  %v3006_v57 = vor.u32 %v4219_v49, %v3003_v51  ;;  %v4183_v59 = vld [vmem:[%s6675_s1 + $0x84] sm:$0xf] }
  0x44   :  { %v5026_v41 = vpack.c.b16 %v310_v24, %v310_v24  ;;  %1708 = vmatpush.bf16.msrb.mxu3 %v3690_v26  ;;  %v5030_v44 = vpack.c.b16 %v311_v28, %v311_v28  ;;  %v3259_v55 = vld [vmem:[%s6675_s1 + $0x3b0] sm:$0xf0]  ;;  %v3134_v58 = vor.u32 %v4251_v52, %v3131_v53  ;;  %v4215_v61 = vld [vmem:[%s6675_s1 + $0x184] sm:$0xf] }
  0x45   :  { %1714 = vmatpush.bf16.msra.mxu0 %v2910_v27  ;;  %v2859_v60 = vld [vmem:[%s6675_s1 + $0x90] sm:$0xf0]  ;;  %v3262_v62 = vor.u32 %v4283_v54, %v3259_v55  ;;  %v4247_v0 = vld [vmem:[%s6675_s1 + $0x284] sm:$0xf] }
  0x46   :  { %1696 = vmatmul.bf16.vlgmr.msrb.gmra.mxu2 %v5018_v38  ;;  %1670 = vmatmul.bf16.vlgmr.msrb.gmra.mxu0 %v5026_v41  ;;  %v2987_v63 = vld [vmem:[%s6675_s1 + $0x190] sm:$0xf0]  ;;  %v4279_v2 = vld [vmem:[%s6675_s1 + $0x384] sm:$0xf]  ;;  %v2862_v4 = vor.u32 %v4183_v59, %v2859_v60 }
  0x47   :  { %1727 = vmatpush.bf16.msra.mxu1 %v3038_v29  ;;  %1740 = vmatpush.bf16.msra.mxu2 %v3166_v30  ;;  %v3115_v1 = vld [vmem:[%s6675_s1 + $0x290] sm:$0xf0]  ;;  %v2990_v5 = vor.u32 %v4215_v61, %v2987_v63  ;;  %v4179_v7 = vld [vmem:[%s6675_s1 + $0x64] sm:$0xf] }
  0x48   :  { %1753 = vmatpush.bf16.msra.mxu3 %v3294_v34  ;;  %1683 = vmatmul.bf16.vlgmr.msrb.gmra.mxu1 %v5030_v44  ;;  %v3243_v3 = vld [vmem:[%s6675_s1 + $0x390] sm:$0xf0]  ;;  %v3118_v6 = vor.u32 %v4247_v0, %v3115_v1  ;;  %v4211_v9 = vld [vmem:[%s6675_s1 + $0x164] sm:$0xf] }
  0x49   :  { %1709 = vmatmul.bf16.vlgmr.msrb.gmra.mxu3 %v5028_v42  ;;  %1715 = vmatpush.bf16.msra.mxu0 %v2894_v43  ;;  %v2843_v8 = vld [vmem:[%s6675_s1 + $0x70] sm:$0xf0]  ;;  %v3246_v10 = vor.u32 %v4279_v2, %v3243_v3  ;;  %v4243_v12 = vld [vmem:[%s6675_s1 + $0x264] sm:$0xf] }
  0x4a   :  { %v2971_v11 = vld [vmem:[%s6675_s1 + $0x170] sm:$0xf0]  ;;  %v4275_v14 = vld [vmem:[%s6675_s1 + $0x364] sm:$0xf]  ;;  %v2846_v16 = vor.u32 %v4179_v7, %v2843_v8 }
  0x4b   :  { %1728 = vmatpush.bf16.msra.mxu1 %v3022_v45  ;;  %1741 = vmatpush.bf16.msra.mxu2 %v3150_v46  ;;  %v3099_v13 = vld [vmem:[%s6675_s1 + $0x270] sm:$0xf0]  ;;  %v2974_v17 = vor.u32 %v4211_v9, %v2971_v11  ;;  %v4175_v23 = vld [vmem:[%s6675_s1 + $0x44] sm:$0xf] }
  0x4c   :  { %1754 = vmatpush.bf16.msra.mxu3 %v3278_v50  ;;  %v3227_v15 = vld [vmem:[%s6675_s1 + $0x370] sm:$0xf0]  ;;  %v3102_v21 = vor.u32 %v4243_v12, %v3099_v13  ;;  %v4207_v25 = vld [vmem:[%s6675_s1 + $0x144] sm:$0xf] }
  0x4d   :  { %1716 = vmatpush.bf16.msra.mxu0 %v2878_v56  ;;  %v2827_v24 = vld [vmem:[%s6675_s1 + $0x50] sm:$0xf0]  ;;  %v3230_v26 = vor.u32 %v4275_v14, %v3227_v15  ;;  %v4239_v28 = vld [vmem:[%s6675_s1 + $0x244] sm:$0xf] }
  0x4e   :  { %v2955_v27 = vld [vmem:[%s6675_s1 + $0x150] sm:$0xf0]  ;;  %v4271_v30 = vld [vmem:[%s6675_s1 + $0x344] sm:$0xf]  ;;  %v2830_v32 = vor.u32 %v4175_v23, %v2827_v24 }
  0x4f   :  { %1729 = vmatpush.bf16.msra.mxu1 %v3006_v57  ;;  %1742 = vmatpush.bf16.msra.mxu2 %v3134_v58  ;;  %v3083_v29 = vld [vmem:[%s6675_s1 + $0x250] sm:$0xf0]  ;;  %v2958_v33 = vor.u32 %v4207_v25, %v2955_v27  ;;  %v4171_v35 = vld [vmem:[%s6675_s1 + $0x24] sm:$0xf] }
  0x50   :  { %1755 = vmatpush.bf16.msra.mxu3 %v3262_v62  ;;  %v3211_v31 = vld [vmem:[%s6675_s1 + $0x350] sm:$0xf0]  ;;  %v3086_v34 = vor.u32 %v4239_v28, %v3083_v29  ;;  %v4203_v37 = vld [vmem:[%s6675_s1 + $0x124] sm:$0xf] }
  0x51   :  { %1717 = vmatpush.bf16.msra.mxu0 %v2862_v4  ;;  %v2811_v36 = vld [vmem:[%s6675_s1 + $0x30] sm:$0xf0]  ;;  %v3214_v39 = vor.u32 %v4271_v30, %v3211_v31  ;;  %v4235_v43 = vld [vmem:[%s6675_s1 + $0x224] sm:$0xf] }
  0x52   :  { %v2939_v40 = vld [vmem:[%s6675_s1 + $0x130] sm:$0xf0]  ;;  %v4267_v46 = vld [vmem:[%s6675_s1 + $0x324] sm:$0xf]  ;;  %v2814_v48 = vor.u32 %v4171_v35, %v2811_v36 }
  0x53   :  { %1730 = vmatpush.bf16.msra.mxu1 %v2990_v5  ;;  %1743 = vmatpush.bf16.msra.mxu2 %v3118_v6  ;;  %v3067_v45 = vld [vmem:[%s6675_s1 + $0x230] sm:$0xf0]  ;;  %v4167_v49 = vld [vmem:[%s6675_s1 + $0x4] sm:$0xf]  ;;  %v2942_v51 = vor.u32 %v4203_v37, %v2939_v40 }
  0x54   :  { %1756 = vmatpush.bf16.msra.mxu3 %v3246_v10  ;;  %v3195_v47 = vld [vmem:[%s6675_s1 + $0x330] sm:$0xf0]  ;;  %v3070_v52 = vor.u32 %v4235_v43, %v3067_v45  ;;  %v4199_v53 = vld [vmem:[%s6675_s1 + $0x104] sm:$0xf] }
  0x55   :  { %1718 = vmatpush.bf16.msra.mxu0 %v2846_v16  ;;  %v2795_v50 = vld [vmem:[%s6675_s1 + $0x10] sm:$0xf0]  ;;  %v4231_v55 = vld [vmem:[%s6675_s1 + $0x204] sm:$0xf]  ;;  %v3198_v56 = vor.u32 %v4267_v46, %v3195_v47 }
  0x56   :  { %v2923_v54 = vld [vmem:[%s6675_s1 + $0x110] sm:$0xf0]  ;;  %v4263_v58 = vld [vmem:[%s6675_s1 + $0x304] sm:$0xf]  ;;  %v2798_v63 = vor.u32 %v4167_v49, %v2795_v50 }
  0x57   :  { %1731 = vmatpush.bf16.msra.mxu1 %v2974_v17  ;;  %1744 = vmatpush.bf16.msra.mxu2 %v3102_v21  ;;  %v3051_v57 = vld [vmem:[%s6675_s1 + $0x210] sm:$0xf0]  ;;  %v4323_v60 = vld [vmem:[%s6675_s1 + $0x4e4] sm:$0xf]  ;;  %v2926_v3 = vor.u32 %v4199_v53, %v2923_v54 }
  0x58   :  { %1757 = vmatpush.bf16.msra.mxu3 %v3230_v26  ;;  %v3179_v59 = vld [vmem:[%s6675_s1 + $0x310] sm:$0xf0]  ;;  %v4355_v62 = vld [vmem:[%s6675_s1 + $0x5e4] sm:$0xf]  ;;  %v3054_v4 = vor.u32 %v4231_v55, %v3051_v57 }
  0x59   :  { %1719 = vmatpush.bf16.msra.mxu0 %v2830_v32  ;;  %v3419_v61 = vld [vmem:[%s6675_s1 + $0x4f0] sm:$0xf0]  ;;  %v4387_v1 = vld [vmem:[%s6675_s1 + $0x6e4] sm:$0xf]  ;;  %v3182_v7 = vor.u32 %v4263_v58, %v3179_v59 }
  0x5a   :  { %v3547_v0 = vld [vmem:[%s6675_s1 + $0x5f0] sm:$0xf0]  ;;  %v4419_v5 = vld [vmem:[%s6675_s1 + $0x7e4] sm:$0xf]  ;;  %v3422_v8 = vor.u32 %v4323_v60, %v3419_v61 }
  0x5b   :  { %1732 = vmatpush.bf16.msra.mxu1 %v2958_v33  ;;  %1745 = vmatpush.bf16.msra.mxu2 %v3086_v34  ;;  %v3675_v2 = vld [vmem:[%s6675_s1 + $0x6f0] sm:$0xf0]  ;;  %v3550_v9 = vor.u32 %v4355_v62, %v3547_v0  ;;  %v4319_v11 = vld [vmem:[%s6675_s1 + $0x4c4] sm:$0xf] }
  0x5c   :  { %1758 = vmatpush.bf16.msra.mxu3 %v3214_v39  ;;  %v3803_v6 = vld [vmem:[%s6675_s1 + $0x7f0] sm:$0xf0]  ;;  %v3678_v10 = vor.u32 %v4387_v1, %v3675_v2  ;;  %v4351_v13 = vld [vmem:[%s6675_s1 + $0x5c4] sm:$0xf] }
  0x5d   :  { %1720 = vmatpush.bf16.msra.mxu0 %v2814_v48  ;;  %v3403_v12 = vld [vmem:[%s6675_s1 + $0x4d0] sm:$0xf0]  ;;  %v3806_v14 = vor.u32 %v4419_v5, %v3803_v6  ;;  %v4383_v16 = vld [vmem:[%s6675_s1 + $0x6c4] sm:$0xf] }
  0x5e   :  { %v3531_v15 = vld [vmem:[%s6675_s1 + $0x5d0] sm:$0xf0]  ;;  %v4415_v21 = vld [vmem:[%s6675_s1 + $0x7c4] sm:$0xf]  ;;  %v3406_v24 = vor.u32 %v4319_v11, %v3403_v12 }
  0x5f   :  { %1733 = vmatpush.bf16.msra.mxu1 %v2942_v51  ;;  %1746 = vmatpush.bf16.msra.mxu2 %v3070_v52  ;;  %v3659_v17 = vld [vmem:[%s6675_s1 + $0x6d0] sm:$0xf0]  ;;  %v3534_v25 = vor.u32 %v4351_v13, %v3531_v15  ;;  %v4315_v27 = vld [vmem:[%s6675_s1 + $0x4a4] sm:$0xf] }
  0x60   :  { %1759 = vmatpush.bf16.msra.mxu3 %v3198_v56  ;;  %v3787_v23 = vld [vmem:[%s6675_s1 + $0x7d0] sm:$0xf0]  ;;  %v3662_v26 = vor.u32 %v4383_v16, %v3659_v17  ;;  %v4347_v29 = vld [vmem:[%s6675_s1 + $0x5a4] sm:$0xf] }
  0x61   :  { %1721 = vmatpush.bf16.msra.mxu0 %v2798_v63  ;;  %v3387_v28 = vld [vmem:[%s6675_s1 + $0x4b0] sm:$0xf0]  ;;  %v3790_v30 = vor.u32 %v4415_v21, %v3787_v23  ;;  %v4379_v32 = vld [vmem:[%s6675_s1 + $0x6a4] sm:$0xf] }
  0x62   :  { %v3515_v31 = vld [vmem:[%s6675_s1 + $0x5b0] sm:$0xf0]  ;;  %v4411_v34 = vld [vmem:[%s6675_s1 + $0x7a4] sm:$0xf]  ;;  %v3390_v36 = vor.u32 %v4315_v27, %v3387_v28 }
  0x63   :  { %1734 = vmatpush.bf16.msra.mxu1 %v2926_v3  ;;  %1747 = vmatpush.bf16.msra.mxu2 %v3054_v4  ;;  %v3643_v33 = vld [vmem:[%s6675_s1 + $0x6b0] sm:$0xf0]  ;;  %v3518_v37 = vor.u32 %v4347_v29, %v3515_v31  ;;  %v4311_v40 = vld [vmem:[%s6675_s1 + $0x484] sm:$0xf] }
  0x64   :  { %1760 = vmatpush.bf16.msra.mxu3 %v3182_v7  ;;  %v3771_v35 = vld [vmem:[%s6675_s1 + $0x7b0] sm:$0xf0]  ;;  %1722 = vmatmul.bf16.vlgmr.msra.gmra.mxu0 %v4864_v19  ;;  %v3646_v39 = vor.u32 %v4379_v32, %v3643_v33  ;;  %v4343_v45 = vld [vmem:[%s6675_s1 + $0x584] sm:$0xf] }
  0x65   :  { %1766 = vmatpush.bf16.msrb.mxu0 %v3422_v8  ;;  %v3371_v43 = vld [vmem:[%s6675_s1 + $0x490] sm:$0xf0]  ;;  %v3774_v46 = vor.u32 %v4411_v34, %v3771_v35  ;;  %v4375_v48 = vld [vmem:[%s6675_s1 + $0x684] sm:$0xf] }
  0x66   :  { %1748 = vmatmul.bf16.vlgmr.msra.gmra.mxu2 %v4862_v18  ;;  %1735 = vmatmul.bf16.vlgmr.msra.gmra.mxu1 %v4868_v22  ;;  %v3499_v47 = vld [vmem:[%s6675_s1 + $0x590] sm:$0xf0]  ;;  %v4407_v50 = vld [vmem:[%s6675_s1 + $0x784] sm:$0xf]  ;;  %v3374_v52 = vor.u32 %v4311_v40, %v3371_v43  ;;  %v2913_v43 = vld [vmem:[%s6675_s1 + $0xe8] sm:$0xf] }
  0x67   :  { %1779 = vmatpush.bf16.msrb.mxu1 %v3550_v9  ;;  %1792 = vmatpush.bf16.msrb.mxu2 %v3678_v10  ;;  %v3627_v49 = vld [vmem:[%s6675_s1 + $0x690] sm:$0xf0]  ;;  %v3502_v53 = vor.u32 %v4343_v45, %v3499_v47  ;;  %v4307_v55 = vld [vmem:[%s6675_s1 + $0x464] sm:$0xf]  ;;  %v4198_v45 = vld [vmem:[%s6675_s1 + $0xf4] sm:$0xf0] }
  0x68   :  { %1805 = vmatpush.bf16.msrb.mxu3 %v3806_v14  ;;  %v3755_v51 = vld [vmem:[%s6675_s1 + $0x790] sm:$0xf0]  ;;  %v3630_v54 = vor.u32 %v4375_v48, %v3627_v49  ;;  %v4339_v57 = vld [vmem:[%s6675_s1 + $0x564] sm:$0xf]  ;;  %v4230_v48 = vld [vmem:[%s6675_s1 + $0x1f4] sm:$0xf0] }
  0x69   :  { %1761 = vmatmul.bf16.vlgmr.msra.gmra.mxu3 %v4866_v20  ;;  %1767 = vmatpush.bf16.msrb.mxu0 %v3406_v24  ;;  %v3355_v56 = vld [vmem:[%s6675_s1 + $0x470] sm:$0xf0]  ;;  %v3758_v58 = vor.u32 %v4407_v50, %v3755_v51  ;;  %v4371_v60 = vld [vmem:[%s6675_s1 + $0x664] sm:$0xf]  ;;  %v3169_v49 = vld [vmem:[%s6675_s1 + $0x2e8] sm:$0xf] }
  0x6a   :  { %v3483_v59 = vld [vmem:[%s6675_s1 + $0x570] sm:$0xf0]  ;;  %v4403_v62 = vld [vmem:[%s6675_s1 + $0x764] sm:$0xf]  ;;  %v3358_v0 = vor.u32 %v4307_v55, %v3355_v56  ;;  %v4262_v50 = vld [vmem:[%s6675_s1 + $0x2f4] sm:$0xf0]  ;;  %v2914_v56 = vor.u32 %v4198_v45, %v2913_v43 }
  0x6b   :  { %1780 = vmatpush.bf16.msrb.mxu1 %v3534_v25  ;;  %1793 = vmatpush.bf16.msrb.mxu2 %v3662_v26  ;;  %v3611_v61 = vld [vmem:[%s6675_s1 + $0x670] sm:$0xf0]  ;;  %v3486_v1 = vor.u32 %v4339_v57, %v3483_v59  ;;  %v4303_v3 = vld [vmem:[%s6675_s1 + $0x444] sm:$0xf]  ;;  %v2897_v59 = vld [vmem:[%s6675_s1 + $0xc8] sm:$0xf] }
  0x6c   :  { %1806 = vmatpush.bf16.msrb.mxu3 %v3790_v30  ;;  %v3739_v63 = vld [vmem:[%s6675_s1 + $0x770] sm:$0xf0]  ;;  %v3614_v2 = vor.u32 %v4371_v60, %v3611_v61  ;;  %v4335_v5 = vld [vmem:[%s6675_s1 + $0x544] sm:$0xf]  ;;  %v4194_v60 = vld [vmem:[%s6675_s1 + $0xd4] sm:$0xf0] }
  0x6d   :  { %1768 = vmatpush.bf16.msrb.mxu0 %v3390_v36  ;;  %v3339_v4 = vld [vmem:[%s6675_s1 + $0x450] sm:$0xf0]  ;;  %v3742_v6 = vor.u32 %v4403_v62, %v3739_v63  ;;  %v4367_v8 = vld [vmem:[%s6675_s1 + $0x644] sm:$0xf]  ;;  %v3025_v61 = vld [vmem:[%s6675_s1 + $0x1c8] sm:$0xf] }
  0x6e   :  { %v3467_v7 = vld [vmem:[%s6675_s1 + $0x550] sm:$0xf0]  ;;  %v4399_v10 = vld [vmem:[%s6675_s1 + $0x744] sm:$0xf]  ;;  %v3342_v12 = vor.u32 %v4303_v3, %v3339_v4  ;;  %v4226_v63 = vld [vmem:[%s6675_s1 + $0x1d4] sm:$0xf0]  ;;  %v2898_v4 = vor.u32 %v4194_v60, %v2897_v59 }
  0x6f   :  { %1781 = vmatpush.bf16.msrb.mxu1 %v3518_v37  ;;  %1794 = vmatpush.bf16.msrb.mxu2 %v3646_v39  ;;  %v3595_v9 = vld [vmem:[%s6675_s1 + $0x650] sm:$0xf0]  ;;  %v3470_v13 = vor.u32 %v4335_v5, %v3467_v7  ;;  %v4299_v15 = vld [vmem:[%s6675_s1 + $0x424] sm:$0xf]  ;;  %v4290_v3 = vld [vmem:[%s6675_s1 + $0x3d4] sm:$0xf0]  ;;  %v3026_v5 = vor.u32 %v4226_v63, %v3025_v61 }
  0x70   :  { %1807 = vmatpush.bf16.msrb.mxu3 %v3774_v46  ;;  %v3723_v11 = vld [vmem:[%s6675_s1 + $0x750] sm:$0xf0]  ;;  %v3598_v14 = vor.u32 %v4367_v8, %v3595_v9  ;;  %v4331_v17 = vld [vmem:[%s6675_s1 + $0x524] sm:$0xf]  ;;  %v3041_v46 = vld [vmem:[%s6675_s1 + $0x1e8] sm:$0xf] }
  0x71   :  { %1769 = vmatpush.bf16.msrb.mxu0 %v3374_v52  ;;  %v3323_v16 = vld [vmem:[%s6675_s1 + $0x430] sm:$0xf0]  ;;  %v3726_v21 = vor.u32 %v4399_v10, %v3723_v11  ;;  %v4363_v24 = vld [vmem:[%s6675_s1 + $0x624] sm:$0xf]  ;;  %v3042_v57 = vor.u32 %v4230_v48, %v3041_v46  ;;  %v2881_v7 = vld [vmem:[%s6675_s1 + $0xa8] sm:$0xf] }
  0x72   :  { %v3451_v23 = vld [vmem:[%s6675_s1 + $0x530] sm:$0xf0]  ;;  %v4395_v26 = vld [vmem:[%s6675_s1 + $0x724] sm:$0xf]  ;;  %v3326_v28 = vor.u32 %v4299_v15, %v3323_v16  ;;  %v4190_v8 = vld [vmem:[%s6675_s1 + $0xb4] sm:$0xf0] }
  0x73   :  { %1782 = vmatpush.bf16.msrb.mxu1 %v3502_v53  ;;  %1795 = vmatpush.bf16.msrb.mxu2 %v3630_v54  ;;  %v3579_v25 = vld [vmem:[%s6675_s1 + $0x630] sm:$0xf0]  ;;  %v4295_v29 = vld [vmem:[%s6675_s1 + $0x404] sm:$0xf]  ;;  %v3454_v31 = vor.u32 %v4331_v17, %v3451_v23  ;;  %v3297_v53 = vld [vmem:[%s6675_s1 + $0x3e8] sm:$0xf]  ;;  %v2882_v16 = vor.u32 %v4190_v8, %v2881_v7 }
  0x74   :  { %1808 = vmatpush.bf16.msrb.mxu3 %v3758_v58  ;;  %v3707_v27 = vld [vmem:[%s6675_s1 + $0x730] sm:$0xf0]  ;;  %v3582_v32 = vor.u32 %v4363_v24, %v3579_v25  ;;  %v4327_v33 = vld [vmem:[%s6675_s1 + $0x504] sm:$0xf]  ;;  %v4294_v54 = vld [vmem:[%s6675_s1 + $0x3f4] sm:$0xf0]  ;;  %v3170_v58 = vor.u32 %v4262_v50, %v3169_v49 }
  0x75   :  { %1770 = vmatpush.bf16.msrb.mxu0 %v3358_v0  ;;  %v3307_v30 = vld [vmem:[%s6675_s1 + $0x410] sm:$0xf0]  ;;  %v4359_v35 = vld [vmem:[%s6675_s1 + $0x604] sm:$0xf]  ;;  %v3710_v36 = vor.u32 %v4395_v26, %v3707_v27  ;;  %v3298_v62 = vor.u32 %v4294_v54, %v3297_v53  ;;  %v3153_v0 = vld [vmem:[%s6675_s1 + $0x2c8] sm:$0xf] }
  0x76   :  { %v3435_v34 = vld [vmem:[%s6675_s1 + $0x510] sm:$0xf0]  ;;  %v4391_v39 = vld [vmem:[%s6675_s1 + $0x704] sm:$0xf]  ;;  %v3310_v47 = vor.u32 %v4295_v29, %v3307_v30  ;;  %v3009_v9 = vld [vmem:[%s6675_s1 + $0x1a8] sm:$0xf] }
  0x77   :  { %1783 = vmatpush.bf16.msrb.mxu1 %v3486_v1  ;;  %1796 = vmatpush.bf16.msrb.mxu2 %v3614_v2  ;;  %v3563_v37 = vld [vmem:[%s6675_s1 + $0x610] sm:$0xf0]  ;;  %v3438_v51 = vor.u32 %v4327_v33, %v3435_v34  ;;  %v4258_v1 = vld [vmem:[%s6675_s1 + $0x2d4] sm:$0xf0]  ;;  %v3281_v2 = vld [vmem:[%s6675_s1 + $0x3c8] sm:$0xf] }
  0x78   :  { %1809 = vmatpush.bf16.msrb.mxu3 %v3742_v6  ;;  %v3691_v40 = vld [vmem:[%s6675_s1 + $0x710] sm:$0xf0]  ;;  %v3566_v52 = vor.u32 %v4359_v35, %v3563_v37  ;;  %v3154_v6 = vor.u32 %v4258_v1, %v3153_v0  ;;  %v3282_v10 = vor.u32 %v4290_v3, %v3281_v2  ;;  %v4222_v11 = vld [vmem:[%s6675_s1 + $0x1b4] sm:$0xf0]  ;;  %v2865_v23 = vld [vmem:[%s6675_s1 + $0x88] sm:$0xf] }
  0x79   :  { %1771 = vmatpush.bf16.msrb.mxu0 %v3342_v12  ;;  %v3694_v55 = vor.u32 %v4391_v39, %v3691_v40  ;;  %v3137_v12 = vld [vmem:[%s6675_s1 + $0x2a8] sm:$0xf]  ;;  %v4286_v15 = vld [vmem:[%s6675_s1 + $0x3b4] sm:$0xf0]  ;;  %v3010_v17 = vor.u32 %v4222_v11, %v3009_v9 }
  0x7a   :  { %v4186_v24 = vld [vmem:[%s6675_s1 + $0x94] sm:$0xf0]  ;;  %v2993_v25 = vld [vmem:[%s6675_s1 + $0x188] sm:$0xf] }
  0x7b   :  { %1784 = vmatpush.bf16.msrb.mxu1 %v3470_v13  ;;  %1797 = vmatpush.bf16.msrb.mxu2 %v3598_v14  ;;  %v4254_v13 = vld [vmem:[%s6675_s1 + $0x2b4] sm:$0xf0]  ;;  %v3265_v14 = vld [vmem:[%s6675_s1 + $0x3a8] sm:$0xf] }
  0x7c   :  { %1810 = vmatpush.bf16.msrb.mxu3 %v3726_v21  ;;  %v3138_v21 = vor.u32 %v4254_v13, %v3137_v12  ;;  %v3266_v26 = vor.u32 %v4286_v15, %v3265_v14  ;;  %v4218_v27 = vld [vmem:[%s6675_s1 + $0x194] sm:$0xf0]  ;;  %v3249_v30 = vld [vmem:[%s6675_s1 + $0x388] sm:$0xf] }
  0x7d   :  { %1772 = vmatpush.bf16.msrb.mxu0 %v3326_v28  ;;  %v3121_v28 = vld [vmem:[%s6675_s1 + $0x288] sm:$0xf]  ;;  %v4250_v29 = vld [vmem:[%s6675_s1 + $0x294] sm:$0xf0]  ;;  %v2994_v33 = vor.u32 %v4218_v27, %v2993_v25 }
  0x7e   :  { %v3122_v34 = vor.u32 %v4250_v29, %v3121_v28  ;;  %v2849_v35 = vld [vmem:[%s6675_s1 + $0x68] sm:$0xf]  ;;  %v4214_v40 = vld [vmem:[%s6675_s1 + $0x174] sm:$0xf0] }
  0x7f   :  { %1785 = vmatpush.bf16.msrb.mxu1 %v3454_v31  ;;  %1798 = vmatpush.bf16.msrb.mxu2 %v3582_v32  ;;  %v4282_v31 = vld [vmem:[%s6675_s1 + $0x394] sm:$0xf0]  ;;  %v2866_v32 = vor.u32 %v4186_v24, %v2865_v23  ;;  %v2977_v37 = vld [vmem:[%s6675_s1 + $0x168] sm:$0xf] }
  0x80   :  { %1811 = vmatpush.bf16.msrb.mxu3 %v3710_v36  ;;  %v4182_v36 = vld [vmem:[%s6675_s1 + $0x74] sm:$0xf0]  ;;  %v3250_v39 = vor.u32 %v4282_v31, %v3249_v30  ;;  %v3105_v43 = vld [vmem:[%s6675_s1 + $0x268] sm:$0xf]  ;;  %v2978_v49 = vor.u32 %v4214_v40, %v2977_v37 }
  0x81   :  { %1773 = vmatpush.bf16.msrb.mxu0 %v3310_v47  ;;  %v4246_v45 = vld [vmem:[%s6675_s1 + $0x274] sm:$0xf0]  ;;  %v3233_v46 = vld [vmem:[%s6675_s1 + $0x368] sm:$0xf]  ;;  %v2850_v48 = vor.u32 %v4182_v36, %v2849_v35 }
  0x82   :  { %v4278_v47 = vld [vmem:[%s6675_s1 + $0x374] sm:$0xf0]  ;;  %v3106_v50 = vor.u32 %v4246_v45, %v3105_v43  ;;  %v2961_v53 = vld [vmem:[%s6675_s1 + $0x148] sm:$0xf] }
  0x83   :  { %1786 = vmatpush.bf16.msrb.mxu1 %v3438_v51  ;;  %1799 = vmatpush.bf16.msrb.mxu2 %v3566_v52  ;;  %v2833_v51 = vld [vmem:[%s6675_s1 + $0x48] sm:$0xf]  ;;  %v4178_v52 = vld [vmem:[%s6675_s1 + $0x54] sm:$0xf0]  ;;  %v3234_v54 = vor.u32 %v4278_v47, %v3233_v46 }
  0x84   :  { %1812 = vmatpush.bf16.msrb.mxu3 %v3694_v55  ;;  %1774 = vmatmul.bf16.vlgmr.msrb.gmra.mxu0 %v5026_v41  ;;  %v4210_v55 = vld [vmem:[%s6675_s1 + $0x154] sm:$0xf0]  ;;  %v2834_v60 = vor.u32 %v4178_v52, %v2833_v51  ;;  %v2817_v63 = vld [vmem:[%s6675_s1 + $0x28] sm:$0xf] }
  0x85   :  { %1818 = vmatpush.bf16.msra.mxu0 %v2914_v56  ;;  %v3089_v56 = vld [vmem:[%s6675_s1 + $0x248] sm:$0xf]  ;;  %v4274_v59 = vld [vmem:[%s6675_s1 + $0x354] sm:$0xf0]  ;;  %v2962_v61 = vor.u32 %v4210_v55, %v2961_v53 }
  0x86   :  { %1800 = vmatmul.bf16.vlgmr.msrb.gmra.mxu2 %v5018_v38  ;;  %1787 = vmatmul.bf16.vlgmr.msrb.gmra.mxu1 %v5030_v44  ;;  %v4174_v0 = vld [vmem:[%s6675_s1 + $0x34] sm:$0xf0]  ;;  %v2945_v1 = vld [vmem:[%s6675_s1 + $0x128] sm:$0xf] }
  0x87   :  { %1831 = vmatpush.bf16.msra.mxu1 %v3042_v57  ;;  %1844 = vmatpush.bf16.msra.mxu2 %v3170_v58  ;;  %v4242_v57 = vld [vmem:[%s6675_s1 + $0x254] sm:$0xf0]  ;;  %v3217_v58 = vld [vmem:[%s6675_s1 + $0x348] sm:$0xf]  ;;  %v2818_v8 = vor.u32 %v4174_v0, %v2817_v63 }
  0x88   :  { %1857 = vmatpush.bf16.msra.mxu3 %v3298_v62  ;;  %v3090_v62 = vor.u32 %v4242_v57, %v3089_v56  ;;  %v3218_v2 = vor.u32 %v4274_v59, %v3217_v58  ;;  %v4206_v3 = vld [vmem:[%s6675_s1 + $0x134] sm:$0xf0]  ;;  %v2801_v9 = vld [vmem:[%s6675_s1 + $0x8] sm:$0xf] }
  0x89   :  { %1813 = vmatmul.bf16.vlgmr.msrb.gmra.mxu3 %v5028_v42  ;;  %1819 = vmatpush.bf16.msra.mxu0 %v2898_v4  ;;  %v3073_v4 = vld [vmem:[%s6675_s1 + $0x228] sm:$0xf]  ;;  %v4270_v7 = vld [vmem:[%s6675_s1 + $0x334] sm:$0xf0]  ;;  %v2946_v11 = vor.u32 %v4206_v3, %v2945_v1 }
  0x8a   :  { %v2929_v13 = vld [vmem:[%s6675_s1 + $0x108] sm:$0xf]  ;;  %v4202_v14 = vld [vmem:[%s6675_s1 + $0x114] sm:$0xf0] }
  0x8b   :  { %1832 = vmatpush.bf16.msra.mxu1 %v3026_v5  ;;  %1845 = vmatpush.bf16.msra.mxu2 %v3154_v6  ;;  %v4238_v5 = vld [vmem:[%s6675_s1 + $0x234] sm:$0xf0]  ;;  %v3201_v6 = vld [vmem:[%s6675_s1 + $0x328] sm:$0xf]  ;;  %v2930_v31 = vor.u32 %v4202_v14, %v2929_v13 }
  0x8c   :  { %1858 = vmatpush.bf16.msra.mxu3 %v3282_v10  ;;  %v4170_v10 = vld [vmem:[%s6675_s1 + $0x14] sm:$0xf0]  ;;  %v3074_v12 = vor.u32 %v4238_v5, %v3073_v4  ;;  %v3057_v15 = vld [vmem:[%s6675_s1 + $0x208] sm:$0xf] }
  0x8d   :  { %1820 = vmatpush.bf16.msra.mxu0 %v2882_v16  ;;  %v3202_v16 = vor.u32 %v4270_v7, %v3201_v6  ;;  %v4266_v23 = vld [vmem:[%s6675_s1 + $0x314] sm:$0xf0]  ;;  %v3425_v24 = vld [vmem:[%s6675_s1 + $0x4e8] sm:$0xf]  ;;  %v2802_v27 = vor.u32 %v4170_v10, %v2801_v9 }
  0x8e   :  { %v4326_v25 = vld [vmem:[%s6675_s1 + $0x4f4] sm:$0xf0]  ;;  %v3681_v29 = vld [vmem:[%s6675_s1 + $0x6e8] sm:$0xf] }
  0x8f   :  { %1833 = vmatpush.bf16.msra.mxu1 %v3010_v17  ;;  %1846 = vmatpush.bf16.msra.mxu2 %v3138_v21  ;;  %v4234_v17 = vld [vmem:[%s6675_s1 + $0x214] sm:$0xf0]  ;;  %v3185_v21 = vld [vmem:[%s6675_s1 + $0x308] sm:$0xf]  ;;  %v3426_v36 = vor.u32 %v4326_v25, %v3425_v24 }
  0x90   :  { %1859 = vmatpush.bf16.msra.mxu3 %v3266_v26  ;;  %v3553_v26 = vld [vmem:[%s6675_s1 + $0x5e8] sm:$0xf]  ;;  %v4358_v28 = vld [vmem:[%s6675_s1 + $0x5f4] sm:$0xf0]  ;;  %v3186_v35 = vor.u32 %v4266_v23, %v3185_v21 }
  0x91   :  { %1821 = vmatpush.bf16.msra.mxu0 %v2866_v32  ;;  %v4390_v30 = vld [vmem:[%s6675_s1 + $0x6f4] sm:$0xf0]  ;;  %v3058_v32 = vor.u32 %v4234_v17, %v3057_v15  ;;  %v3554_v37 = vor.u32 %v4358_v28, %v3553_v26  ;;  %v3409_v40 = vld [vmem:[%s6675_s1 + $0x4c8] sm:$0xf]  ;;  %v5693_v26 = vld [vmem:[%s6677_s2] sm:$0xf] }
  0x92   :  { %v4322_v43 = vld [vmem:[%s6675_s1 + $0x4d4] sm:$0xf0]  ;;  %v3537_v45 = vld [vmem:[%s6675_s1 + $0x5c8] sm:$0xf] }
  0x93   :  { %1834 = vmatpush.bf16.msra.mxu1 %v2994_v33  ;;  %1847 = vmatpush.bf16.msra.mxu2 %v3122_v34  ;;  %v3809_v33 = vld [vmem:[%s6675_s1 + $0x7e8] sm:$0xf]  ;;  %v4422_v34 = vld [vmem:[%s6675_s1 + $0x7f4] sm:$0xf0]  ;;  %v3410_v52 = vor.u32 %v4322_v43, %v3409_v40 }
  0x94   :  { %1860 = vmatpush.bf16.msra.mxu3 %v3250_v39  ;;  %v3682_v39 = vor.u32 %v4390_v30, %v3681_v29  ;;  %v3810_v46 = vor.u32 %v4422_v34, %v3809_v33  ;;  %v4354_v47 = vld [vmem:[%s6675_s1 + $0x5d4] sm:$0xf0]  ;;  %v3393_v55 = vld [vmem:[%s6675_s1 + $0x4a8] sm:$0xf] }
  0x95   :  { %1822 = vmatpush.bf16.msra.mxu0 %v2850_v48  ;;  %v3665_v48 = vld [vmem:[%s6675_s1 + $0x6c8] sm:$0xf]  ;;  %v4418_v51 = vld [vmem:[%s6675_s1 + $0x7d4] sm:$0xf0]  ;;  %v3538_v53 = vor.u32 %v4354_v47, %v3537_v45 }
  0x96   :  { %v4318_v56 = vld [vmem:[%s6675_s1 + $0x4b4] sm:$0xf0]  ;;  %v3521_v57 = vld [vmem:[%s6675_s1 + $0x5a8] sm:$0xf] }
  0x97   :  { %1835 = vmatpush.bf16.msra.mxu1 %v2978_v49  ;;  %1848 = vmatpush.bf16.msra.mxu2 %v3106_v50  ;;  %v4386_v49 = vld [vmem:[%s6675_s1 + $0x6d4] sm:$0xf0]  ;;  %v3793_v50 = vld [vmem:[%s6675_s1 + $0x7c8] sm:$0xf]  ;;  %v3394_v0 = vor.u32 %v4318_v56, %v3393_v55 }
  0x98   :  { %1861 = vmatpush.bf16.msra.mxu3 %v3234_v54  ;;  %v3666_v54 = vor.u32 %v4386_v49, %v3665_v48  ;;  %v3794_v58 = vor.u32 %v4418_v51, %v3793_v50  ;;  %v4350_v59 = vld [vmem:[%s6675_s1 + $0x5b4] sm:$0xf0]  ;;  %v3377_v3 = vld [vmem:[%s6675_s1 + $0x488] sm:$0xf] }
  0x99   :  { %1823 = vmatpush.bf16.msra.mxu0 %v2834_v60  ;;  %v3649_v60 = vld [vmem:[%s6675_s1 + $0x6a8] sm:$0xf]  ;;  %v4414_v63 = vld [vmem:[%s6675_s1 + $0x7b4] sm:$0xf0]  ;;  %v3522_v1 = vor.u32 %v4350_v59, %v3521_v57 }
  0x9a   :  { %v4314_v4 = vld [vmem:[%s6675_s1 + $0x494] sm:$0xf0]  ;;  %v3505_v5 = vld [vmem:[%s6675_s1 + $0x588] sm:$0xf] }
  0x9b   :  { %1836 = vmatpush.bf16.msra.mxu1 %v2962_v61  ;;  %1849 = vmatpush.bf16.msra.mxu2 %v3090_v62  ;;  %v4382_v61 = vld [vmem:[%s6675_s1 + $0x6b4] sm:$0xf0]  ;;  %v3777_v62 = vld [vmem:[%s6675_s1 + $0x7a8] sm:$0xf] }
  0x9c   :  { %1862 = vmatpush.bf16.msra.mxu3 %v3218_v2  ;;  %v3650_v2 = vor.u32 %v4382_v61, %v3649_v60  ;;  %v3778_v6 = vor.u32 %v4414_v63, %v3777_v62  ;;  %v4346_v7 = vld [vmem:[%s6675_s1 + $0x594] sm:$0xf0]  ;;  %v3761_v10 = vld [vmem:[%s6675_s1 + $0x788] sm:$0xf] }
  0x9d   :  { %1824 = vmatpush.bf16.msra.mxu0 %v2818_v8  ;;  %v3633_v8 = vld [vmem:[%s6675_s1 + $0x688] sm:$0xf]  ;;  %v4378_v9 = vld [vmem:[%s6675_s1 + $0x694] sm:$0xf0]  ;;  %v3506_v14 = vor.u32 %v4346_v7, %v3505_v5 }
  0x9e   :  { %v3361_v13 = vld [vmem:[%s6675_s1 + $0x468] sm:$0xf]  ;;  %v3634_v15 = vor.u32 %v4378_v9, %v3633_v8  ;;  %v4342_v21 = vld [vmem:[%s6675_s1 + $0x574] sm:$0xf0] }
  0x9f   :  { %1837 = vmatpush.bf16.msra.mxu1 %v2946_v11  ;;  %1850 = vmatpush.bf16.msra.mxu2 %v3074_v12  ;;  %v4410_v11 = vld [vmem:[%s6675_s1 + $0x794] sm:$0xf0]  ;;  %v3378_v12 = vor.u32 %v4314_v4, %v3377_v3  ;;  %v3489_v17 = vld [vmem:[%s6675_s1 + $0x568] sm:$0xf] }
  0xa0   :  { %1863 = vmatpush.bf16.msra.mxu3 %v3202_v16  ;;  %v4310_v16 = vld [vmem:[%s6675_s1 + $0x474] sm:$0xf0]  ;;  %v3762_v23 = vor.u32 %v4410_v11, %v3761_v10  ;;  %v3617_v24 = vld [vmem:[%s6675_s1 + $0x668] sm:$0xf] }
  0xa1   :  { %1825 = vmatpush.bf16.msra.mxu0 %v2802_v27  ;;  %v4374_v25 = vld [vmem:[%s6675_s1 + $0x674] sm:$0xf0]  ;;  %v3745_v27 = vld [vmem:[%s6675_s1 + $0x768] sm:$0xf]  ;;  %v3362_v29 = vor.u32 %v4310_v16, %v3361_v13  ;;  %v4196_v13 = vld [vmem:[%s6675_s1 + $0xec] sm:$0xf] }
  0xa2   :  { %v4406_v28 = vld [vmem:[%s6675_s1 + $0x774] sm:$0xf0]  ;;  %v3345_v30 = vld [vmem:[%s6675_s1 + $0x448] sm:$0xf] }
  0xa3   :  { %1838 = vmatpush.bf16.msra.mxu1 %v2930_v31  ;;  %1851 = vmatpush.bf16.msra.mxu2 %v3058_v32  ;;  %v3490_v31 = vor.u32 %v4342_v21, %v3489_v17  ;;  %v3618_v32 = vor.u32 %v4374_v25, %v3617_v24  ;;  %v4306_v33 = vld [vmem:[%s6675_s1 + $0x454] sm:$0xf0]  ;;  %v3473_v34 = vld [vmem:[%s6675_s1 + $0x548] sm:$0xf]  ;;  %v3043_v17 = vld [vmem:[%s6675_s1 + $0x1f8] sm:$0xf0] }
  0xa4   :  { %1864 = vmatpush.bf16.msra.mxu3 %v3186_v35  ;;  %1826 = vmatmul.bf16.vlgmr.msra.gmra.mxu0 %v4864_v19  ;;  %v294_v35 = vperm.slane %v5693_v26, 0  ;;  %v4370_v40 = vld [vmem:[%s6675_s1 + $0x654] sm:$0xf0]  ;;  %v3729_v43 = vld [vmem:[%s6675_s1 + $0x748] sm:$0xf] }
  0xa5   :  { %1870 = vmatpush.bf16.msrb.mxu0 %v3426_v36  ;;  %v3746_v36 = vor.u32 %v4406_v28, %v3745_v27  ;;  %v4402_v45 = vld [vmem:[%s6675_s1 + $0x754] sm:$0xf0]  ;;  %v3329_v50 = vld [vmem:[%s6675_s1 + $0x428] sm:$0xf]  ;;  %v4260_v21 = vld [vmem:[%s6675_s1 + $0x2ec] sm:$0xf] }
  0xa6   :  { %1852 = vmatmul.bf16.vlgmr.msra.gmra.mxu2 %v4862_v18  ;;  %1839 = vmatmul.bf16.vlgmr.msra.gmra.mxu1 %v4868_v22  ;;  %v4302_v51 = vld [vmem:[%s6675_s1 + $0x434] sm:$0xf0]  ;;  %v3730_v55 = vor.u32 %v4402_v45, %v3729_v43  ;;  %v3585_v57 = vld [vmem:[%s6675_s1 + $0x628] sm:$0xf]  ;;  %v3027_v43 = vld [vmem:[%s6675_s1 + $0x1d8] sm:$0xf0] }
  0xa7   :  { %1883 = vmatpush.bf16.msrb.mxu1 %v3554_v37  ;;  %1896 = vmatpush.bf16.msrb.mxu2 %v3682_v39  ;;  %v4338_v37 = vld [vmem:[%s6675_s1 + $0x554] sm:$0xf0]  ;;  %v3601_v39 = vld [vmem:[%s6675_s1 + $0x648] sm:$0xf]  ;;  %v3330_v62 = vor.u32 %v4302_v51, %v3329_v50  ;;  %v4256_v45 = vld [vmem:[%s6675_s1 + $0x2cc] sm:$0xf] }
  0xa8   :  { %1909 = vmatpush.bf16.msrb.mxu3 %v3810_v46  ;;  %v3346_v46 = vor.u32 %v4306_v33, %v3345_v30  ;;  %v3474_v48 = vor.u32 %v4338_v37, %v3473_v34  ;;  %v3602_v49 = vor.u32 %v4370_v40, %v3601_v39  ;;  %v4334_v56 = vld [vmem:[%s6675_s1 + $0x534] sm:$0xf0]  ;;  %v3713_v59 = vld [vmem:[%s6675_s1 + $0x728] sm:$0xf]  ;;  %v3299_v30 = vld [vmem:[%s6675_s1 + $0x3f8] sm:$0xf0] }
  0xa9   :  { %1865 = vmatmul.bf16.vlgmr.msra.gmra.mxu3 %v4866_v20  ;;  %1871 = vmatpush.bf16.msrb.mxu0 %v3410_v52  ;;  %v3457_v52 = vld [vmem:[%s6675_s1 + $0x528] sm:$0xf]  ;;  %v4398_v60 = vld [vmem:[%s6675_s1 + $0x734] sm:$0xf0]  ;;  %v2899_v37 = vld [vmem:[%s6675_s1 + $0xd8] sm:$0xf0] }
  0xaa   :  { %v3313_v63 = vld [vmem:[%s6675_s1 + $0x408] sm:$0xf]  ;;  %v4330_v4 = vld [vmem:[%s6675_s1 + $0x514] sm:$0xf0]  ;;  %v3714_v7 = vor.u32 %v4398_v60, %v3713_v59  ;;  %v4224_v39 = vld [vmem:[%s6675_s1 + $0x1cc] sm:$0xf] }
  0xab   :  { %1884 = vmatpush.bf16.msrb.mxu1 %v3538_v53  ;;  %1897 = vmatpush.bf16.msrb.mxu2 %v3666_v54  ;;  %v3441_v3 = vld [vmem:[%s6675_s1 + $0x508] sm:$0xf]  ;;  %v4362_v8 = vld [vmem:[%s6675_s1 + $0x614] sm:$0xf0]  ;;  %v4252_v59 = vld [vmem:[%s6675_s1 + $0x2ac] sm:$0xf] }
  0xac   :  { %1910 = vmatpush.bf16.msrb.mxu3 %v3794_v58  ;;  %v4366_v58 = vld [vmem:[%s6675_s1 + $0x634] sm:$0xf0]  ;;  %v3569_v5 = vld [vmem:[%s6675_s1 + $0x608] sm:$0xf]  ;;  %v3442_v27 = vor.u32 %v4330_v4, %v3441_v3  ;;  %v3139_v60 = vld [vmem:[%s6675_s1 + $0x2b8] sm:$0xf0] }
  0xad   :  { %1872 = vmatpush.bf16.msrb.mxu0 %v3394_v0  ;;  %v4298_v0 = vld [vmem:[%s6675_s1 + $0x414] sm:$0xf0]  ;;  %v3697_v9 = vld [vmem:[%s6675_s1 + $0x708] sm:$0xf]  ;;  %v3570_v28 = vor.u32 %v4362_v8, %v3569_v5  ;;  %v2867_v3 = vld [vmem:[%s6675_s1 + $0x98] sm:$0xf0] }
  0xae   :  { %v4394_v10 = vld [vmem:[%s6675_s1 + $0x714] sm:$0xf0]  ;;  %v3314_v16 = vor.u32 %v4298_v0, %v3313_v63  ;;  %v4216_v4 = vld [vmem:[%s6675_s1 + $0x18c] sm:$0xf]  ;;  %v3123_v8 = vld [vmem:[%s6675_s1 + $0x298] sm:$0xf0] }
  0xaf   :  { %1885 = vmatpush.bf16.msrb.mxu1 %v3522_v1  ;;  %1898 = vmatpush.bf16.msrb.mxu2 %v3650_v2  ;;  %v1619_v47 = vpop.f32.mrf.mxu0  ;;  %v1632_v54 = vpop.f32.mrf.mxu1  ;;  %v3458_v1 = vor.u32 %v4334_v56, %v3457_v52  ;;  %v3586_v2 = vor.u32 %v4366_v58, %v3585_v57  ;;  %v3030_v52 = vor.u32 %v4224_v39, %v3027_v43  ;;  %v4220_v56 = vld [vmem:[%s6675_s1 + $0x1ac] sm:$0xf]  ;;  %v3011_v58 = vld [vmem:[%s6675_s1 + $0x1b8] sm:$0xf0] }
  0xb0   :  { %1911 = vmatpush.bf16.msrb.mxu3 %v3778_v6  ;;  %v1620_v53 = vadd.f32 %v1619_v47, %v294_v35  ;;  %v1645_v6 = vpop.f32.mrf.mxu2  ;;  %v4288_v47 = vld [vmem:[%s6675_s1 + $0x3cc] sm:$0xf]  ;;  %v3014_v0 = vor.u32 %v4220_v56, %v3011_v58  ;;  %v2963_v43 = vld [vmem:[%s6675_s1 + $0x158] sm:$0xf0] }
  0xb1   :  { %1873 = vmatpush.bf16.msrb.mxu0 %v3378_v12  ;;  %v1658_v12 = vpop.f32.mrf.mxu3  ;;  %v4172_v56 = vld [vmem:[%s6675_s1 + $0x2c] sm:$0xf] }
  0xb2   :  { %v1633_v61 = vadd.f32 %v1632_v54, %v1620_v53  ;;  %v4188_v54 = vld [vmem:[%s6675_s1 + $0xac] sm:$0xf] }
  0xb3   :  { %1886 = vmatpush.bf16.msrb.mxu1 %v3506_v14  ;;  %1899 = vmatpush.bf16.msrb.mxu2 %v3634_v15  ;;  %v2915_v14 = vld [vmem:[%s6675_s1 + $0xf8] sm:$0xf0]  ;;  %v4228_v15 = vld [vmem:[%s6675_s1 + $0x1ec] sm:$0xf] }
  0xb4   :  { %1912 = vmatpush.bf16.msrb.mxu3 %v3762_v23  ;;  %v1646_v11 = vadd.f32 %v1645_v6, %v1633_v61  ;;  %v3171_v23 = vld [vmem:[%s6675_s1 + $0x2f8] sm:$0xf0]  ;;  %v2918_v33 = vor.u32 %v4196_v13, %v2915_v14  ;;  %v3046_v34 = vor.u32 %v4228_v15, %v3043_v17  ;;  %v4284_v61 = vld [vmem:[%s6675_s1 + $0x3ac] sm:$0xf] }
  0xb5   :  { %1874 = vmatpush.bf16.msrb.mxu0 %v3362_v29  ;;  %v4292_v29 = vld [vmem:[%s6675_s1 + $0x3ec] sm:$0xf]  ;;  %v3174_v35 = vor.u32 %v4260_v21, %v3171_v23  ;;  %v2995_v6 = vld [vmem:[%s6675_s1 + $0x198] sm:$0xf0] }
  0xb6   :  { %v5792_v24 = vadd.f32 %v1658_v12, %v1646_v11  ;;  %v3302_v40 = vor.u32 %v4292_v29, %v3299_v30  ;;  %v2998_v13 = vor.u32 %v4216_v4, %v2995_v6  ;;  %v4180_v15 = vld [vmem:[%s6675_s1 + $0x6c] sm:$0xf]  ;;  %v3107_v29 = vld [vmem:[%s6675_s1 + $0x278] sm:$0xf0] }
  0xb7   :  { %1887 = vmatpush.bf16.msrb.mxu1 %v3490_v31  ;;  %1900 = vmatpush.bf16.msrb.mxu2 %v3618_v32  ;;  %v1621_v25 = vpop.f32.mrf.mxu0  ;;  %v1634_v31 = vpop.f32.mrf.mxu1  ;;  %v3698_v32 = vor.u32 %v4394_v10, %v3697_v9  ;;  %v4280_v9 = vld [vmem:[%s6675_s1 + $0x38c] sm:$0xf]  ;;  %v3251_v10 = vld [vmem:[%s6675_s1 + $0x398] sm:$0xf0] }
  0xb8   :  { %1913 = vmatpush.bf16.msrb.mxu3 %v3746_v36  ;;  %v4192_v36 = vld [vmem:[%s6675_s1 + $0xcc] sm:$0xf]  ;;  %v3254_v25 = vor.u32 %v4280_v9, %v3251_v10  ;;  %v2803_v4 = vld [vmem:[%s6675_s1 + $0x18] sm:$0xf0] }
  0xb9   :  { %1875 = vmatpush.bf16.msrb.mxu0 %v3346_v46  ;;  %v3155_v46 = vld [vmem:[%s6675_s1 + $0x2d8] sm:$0xf0]  ;;  %v2902_v50 = vor.u32 %v4192_v36, %v2899_v37  ;;  %v1660_v51 = vpop.f32.mrf.mxu3  ;;  %v4212_v17 = vld [vmem:[%s6675_s1 + $0x16c] sm:$0xf] }
  0xba   :  { %v3158_v53 = vor.u32 %v4256_v45, %v3155_v46  ;;  %v4276_v30 = vld [vmem:[%s6675_s1 + $0x36c] sm:$0xf]  ;;  %v2835_v36 = vld [vmem:[%s6675_s1 + $0x58] sm:$0xf0] }
  0xbb   :  { %1888 = vmatpush.bf16.msrb.mxu1 %v3474_v48  ;;  %1901 = vmatpush.bf16.msrb.mxu2 %v3602_v49  ;;  %v3283_v48 = vld [vmem:[%s6675_s1 + $0x3d8] sm:$0xf0]  ;;  %v1647_v49 = vpop.f32.mrf.mxu2  ;;  %v4208_v37 = vld [vmem:[%s6675_s1 + $0x14c] sm:$0xf] }
  0xbc   :  { %1914 = vmatpush.bf16.msrb.mxu3 %v3730_v55  ;;  %v2883_v55 = vld [vmem:[%s6675_s1 + $0xb8] sm:$0xf0]  ;;  %v3286_v57 = vor.u32 %v4288_v47, %v3283_v48  ;;  %v4240_v45 = vld [vmem:[%s6675_s1 + $0x24c] sm:$0xf] }
  0xbd   :  { %1876 = vmatpush.bf16.msrb.mxu0 %v3330_v62  ;;  %v3267_v62 = vld [vmem:[%s6675_s1 + $0x3b8] sm:$0xf0]  ;;  %v2886_v63 = vor.u32 %v4188_v54, %v2883_v55  ;;  %v4272_v49 = vld [vmem:[%s6675_s1 + $0x34c] sm:$0xf]  ;;  %v2966_v54 = vor.u32 %v4208_v37, %v2963_v43 }
  0xbe   :  { %v3270_v5 = vor.u32 %v4284_v61, %v3267_v62  ;;  %v3091_v46 = vld [vmem:[%s6675_s1 + $0x258] sm:$0xf0]  ;;  %v4204_v58 = vld [vmem:[%s6675_s1 + $0x12c] sm:$0xf] }
  0xbf   :  { %1889 = vmatpush.bf16.msrb.mxu1 %v3458_v1  ;;  %1902 = vmatpush.bf16.msrb.mxu2 %v3586_v2  ;;  %v3142_v1 = vor.u32 %v4252_v59, %v3139_v60  ;;  %v4184_v2 = vld [vmem:[%s6675_s1 + $0x8c] sm:$0xf]  ;;  %v3094_v55 = vor.u32 %v4240_v45, %v3091_v46  ;;  %v2947_v61 = vld [vmem:[%s6675_s1 + $0x138] sm:$0xf0] }
  0xc0   :  { %1915 = vmatpush.bf16.msrb.mxu3 %v3714_v7  ;;  %v4248_v7 = vld [vmem:[%s6675_s1 + $0x28c] sm:$0xf]  ;;  %v2870_v11 = vor.u32 %v4184_v2, %v2867_v3  ;;  %v3411_v37 = vld [vmem:[%s6675_s1 + $0x4d8] sm:$0xf0] }
  0xc1   :  { %1877 = vmatpush.bf16.msrb.mxu0 %v3314_v16  ;;  %v3126_v14 = vor.u32 %v4248_v7, %v3123_v8  ;;  %v2851_v16 = vld [vmem:[%s6675_s1 + $0x78] sm:$0xf0]  ;;  %v4236_v62 = vld [vmem:[%s6675_s1 + $0x22c] sm:$0xf] }
  0xc2   :  { %v4168_v3 = vld [vmem:[%s6675_s1 + $0xc] sm:$0xf]  ;;  %v2931_v8 = vld [vmem:[%s6675_s1 + $0x118] sm:$0xf0] }
  0xc3   :  { %1890 = vmatpush.bf16.msrb.mxu1 %v3442_v27  ;;  %1903 = vmatpush.bf16.msrb.mxu2 %v3570_v28  ;;  %v1671_v12 = vpop.f32.mrf.mxu0  ;;  %v2979_v27 = vld [vmem:[%s6675_s1 + $0x178] sm:$0xf0]  ;;  %v4244_v28 = vld [vmem:[%s6675_s1 + $0x26c] sm:$0xf] }
  0xc4   :  { %1916 = vmatpush.bf16.msrb.mxu3 %v3698_v32  ;;  %1878 = vmatmul.bf16.vlgmr.msrb.gmra.mxu0 %v5026_v41  ;;  %v1672_v21 = vadd.f32 %v1671_v12, %v5792_v24  ;;  %v3235_v24 = vld [vmem:[%s6675_s1 + $0x378] sm:$0xf0]  ;;  %v2854_v32 = vor.u32 %v4180_v15, %v2851_v16  ;;  %v4200_v7 = vld [vmem:[%s6675_s1 + $0x10c] sm:$0xf] }
  0xc5   :  { %1922 = vmatpush.bf16.msra.mxu0 %v2918_v33  ;;  %v1684_v23 = vpop.f32.mrf.mxu1  ;;  %v2982_v33 = vor.u32 %v4212_v17, %v2979_v27  ;;  %v4232_v9 = vld [vmem:[%s6675_s1 + $0x20c] sm:$0xf]  ;;  %v3059_v12 = vld [vmem:[%s6675_s1 + $0x218] sm:$0xf0] }
  0xc6   :  { %1904 = vmatmul.bf16.vlgmr.msrb.gmra.mxu2 %v5018_v38  ;;  %1891 = vmatmul.bf16.vlgmr.msrb.gmra.mxu1 %v5030_v44  ;;  %v1685_v31 = vadd.f32 %v1684_v23, %v1672_v21  ;;  %v4324_v16 = vld [vmem:[%s6675_s1 + $0x4ec] sm:$0xf]  ;;  %v3427_v17 = vld [vmem:[%s6675_s1 + $0x4f8] sm:$0xf0]  ;;  %v2806_v23 = vor.u32 %v4168_v3, %v2803_v4 }
  0xc7   :  { %1935 = vmatpush.bf16.msra.mxu1 %v3046_v34  ;;  %1948 = vmatpush.bf16.msra.mxu2 %v3174_v35  ;;  %v3110_v34 = vor.u32 %v4244_v28, %v3107_v29  ;;  %v4176_v35 = vld [vmem:[%s6675_s1 + $0x4c] sm:$0xf]  ;;  %v3683_v28 = vld [vmem:[%s6675_s1 + $0x6f8] sm:$0xf0]  ;;  %v2934_v29 = vor.u32 %v4200_v7, %v2931_v8 }
  0xc8   :  { %1961 = vmatpush.bf16.msra.mxu3 %v3302_v40  ;;  %v3238_v40 = vor.u32 %v4276_v30, %v3235_v24  ;;  %v2838_v51 = vor.u32 %v4176_v35, %v2835_v36  ;;  %v4356_v21 = vld [vmem:[%s6675_s1 + $0x5ec] sm:$0xf]  ;;  %v3062_v30 = vor.u32 %v4232_v9, %v3059_v12  ;;  %v3539_v43 = vld [vmem:[%s6675_s1 + $0x5d8] sm:$0xf0] }
  0xc9   :  { %1917 = vmatmul.bf16.vlgmr.msrb.gmra.mxu3 %v5028_v42  ;;  %1923 = vmatpush.bf16.msra.mxu0 %v2902_v50  ;;  %v1697_v39 = vpop.f32.mrf.mxu2  ;;  %v3219_v50 = vld [vmem:[%s6675_s1 + $0x358] sm:$0xf0]  ;;  %v4388_v27 = vld [vmem:[%s6675_s1 + $0x6ec] sm:$0xf] }
  0xca   :  { %v1698_v47 = vadd.f32 %v1697_v39, %v1685_v31  ;;  %v3222_v60 = vor.u32 %v4272_v49, %v3219_v50  ;;  %v4420_v24 = vld [vmem:[%s6675_s1 + $0x7ec] sm:$0xf]  ;;  %v3811_v31 = vld [vmem:[%s6675_s1 + $0x7f8] sm:$0xf0]  ;;  %v3686_v35 = vor.u32 %v4388_v27, %v3683_v28 }
  0xcb   :  { %1936 = vmatpush.bf16.msra.mxu1 %v3030_v52  ;;  %1949 = vmatpush.bf16.msra.mxu2 %v3158_v53  ;;  %v1673_v53 = vpop.f32.mrf.mxu0  ;;  %v4320_v36 = vld [vmem:[%s6675_s1 + $0x4cc] sm:$0xf]  ;;  %v3667_v46 = vld [vmem:[%s6675_s1 + $0x6d8] sm:$0xf0] }
  0xcc   :  { %1962 = vmatpush.bf16.msra.mxu3 %v3286_v57  ;;  %v1710_v48 = vpop.f32.mrf.mxu3  ;;  %v2819_v57 = vld [vmem:[%s6675_s1 + $0x38] sm:$0xf0]  ;;  %v4352_v39 = vld [vmem:[%s6675_s1 + $0x5cc] sm:$0xf]  ;;  %v3414_v49 = vor.u32 %v4320_v36, %v3411_v37 }
  0xcd   :  { %1924 = vmatpush.bf16.msra.mxu0 %v2886_v63  ;;  %v5925_v52 = vadd.f32 %v1710_v48, %v1698_v47  ;;  %v1686_v59 = vpop.f32.mrf.mxu1  ;;  %v3075_v63 = vld [vmem:[%s6675_s1 + $0x238] sm:$0xf0]  ;;  %v2822_v2 = vor.u32 %v4172_v56, %v2819_v57  ;;  %v4384_v45 = vld [vmem:[%s6675_s1 + $0x6cc] sm:$0xf]  ;;  %v3542_v50 = vor.u32 %v4352_v39, %v3539_v43 }
  0xce   :  { %v3078_v6 = vor.u32 %v4236_v62, %v3075_v63  ;;  %v4416_v47 = vld [vmem:[%s6675_s1 + $0x7cc] sm:$0xf]  ;;  %v3795_v48 = vld [vmem:[%s6675_s1 + $0x7d8] sm:$0xf0] }
  0xcf   :  { %1937 = vmatpush.bf16.msra.mxu1 %v3014_v0  ;;  %1950 = vmatpush.bf16.msra.mxu2 %v3142_v1  ;;  %v4268_v0 = vld [vmem:[%s6675_s1 + $0x32c] sm:$0xf]  ;;  %v3203_v1 = vld [vmem:[%s6675_s1 + $0x338] sm:$0xf0]  ;;  %v3798_v56 = vor.u32 %v4416_v47, %v3795_v48 }
  0xd0   :  { %1963 = vmatpush.bf16.msra.mxu3 %v3270_v5  ;;  %v2950_v5 = vor.u32 %v4204_v58, %v2947_v61  ;;  %v4316_v53 = vld [vmem:[%s6675_s1 + $0x4ac] sm:$0xf]  ;;  %v3523_v57 = vld [vmem:[%s6675_s1 + $0x5b8] sm:$0xf0] }
  0xd1   :  { %1925 = vmatpush.bf16.msra.mxu0 %v2870_v11  ;;  %v1699_v10 = vpop.f32.mrf.mxu2  ;;  %v3206_v11 = vor.u32 %v4268_v0, %v3203_v1  ;;  %v4380_v58 = vld [vmem:[%s6675_s1 + $0x6ac] sm:$0xf]  ;;  %v3651_v59 = vld [vmem:[%s6675_s1 + $0x6b8] sm:$0xf0] }
  0xd2   :  { %v3654_v63 = vor.u32 %v4380_v58, %v3651_v59  ;;  %v4312_v0 = vld [vmem:[%s6675_s1 + $0x48c] sm:$0xf]  ;;  %v3379_v1 = vld [vmem:[%s6675_s1 + $0x498] sm:$0xf0]  ;;  %v295_v58 = vperm.slane %v5693_v26, 1 }
  0xd3   :  { %1938 = vmatpush.bf16.msra.mxu1 %v2998_v13  ;;  %1951 = vmatpush.bf16.msra.mxu2 %v3126_v14  ;;  %v4264_v13 = vld [vmem:[%s6675_s1 + $0x30c] sm:$0xf]  ;;  %v3187_v14 = vld [vmem:[%s6675_s1 + $0x318] sm:$0xf0] }
  0xd4   :  { %1964 = vmatpush.bf16.msra.mxu3 %v3254_v25  ;;  %v1712_v15 = vpop.f32.mrf.mxu3  ;;  %v3555_v25 = vld [vmem:[%s6675_s1 + $0x5f8] sm:$0xf0]  ;;  %v4408_v4 = vld [vmem:[%s6675_s1 + $0x78c] sm:$0xf] }
  0xd5   :  { %1926 = vmatpush.bf16.msra.mxu0 %v2854_v32  ;;  %v3190_v32 = vor.u32 %v4264_v13, %v3187_v14  ;;  %v3635_v3 = vld [vmem:[%s6675_s1 + $0x698] sm:$0xf0]  ;;  %v4308_v10 = vld [vmem:[%s6675_s1 + $0x46c] sm:$0xf] }
  0xd6   :  { %v4340_v12 = vld [vmem:[%s6675_s1 + $0x56c] sm:$0xf]  ;;  %v3491_v15 = vld [vmem:[%s6675_s1 + $0x578] sm:$0xf0] }
  0xd7   :  { %1939 = vmatpush.bf16.msra.mxu1 %v2982_v33  ;;  %1952 = vmatpush.bf16.msra.mxu2 %v3110_v34  ;;  %v3430_v33 = vor.u32 %v4324_v16, %v3427_v17  ;;  %v3558_v34 = vor.u32 %v4356_v21, %v3555_v25  ;;  %v4372_v16 = vld [vmem:[%s6675_s1 + $0x66c] sm:$0xf]  ;;  %v3619_v17 = vld [vmem:[%s6675_s1 + $0x678] sm:$0xf0]  ;;  %v3494_v27 = vor.u32 %v4340_v12, %v3491_v15 }
  0xd8   :  { %1965 = vmatpush.bf16.msra.mxu3 %v3238_v40  ;;  %v3814_v40 = vor.u32 %v4420_v24, %v3811_v31  ;;  %v4404_v21 = vld [vmem:[%s6675_s1 + $0x76c] sm:$0xf]  ;;  %v3622_v28 = vor.u32 %v4372_v16, %v3619_v17  ;;  %v3731_v39 = vld [vmem:[%s6675_s1 + $0x758] sm:$0xf0]  ;;  %v3865_v17 = vld [vmem:[%s6678_s3 + $0x60] sm:$0xf] }
  0xd9   :  { %1927 = vmatpush.bf16.msra.mxu0 %v2838_v51  ;;  %v3670_v51 = vor.u32 %v4384_v45, %v3667_v46  ;;  %v4336_v24 = vld [vmem:[%s6675_s1 + $0x54c] sm:$0xf]  ;;  %v3331_v48 = vld [vmem:[%s6675_s1 + $0x438] sm:$0xf0] }
  0xda   :  { %v4400_v37 = vld [vmem:[%s6675_s1 + $0x74c] sm:$0xf]  ;;  %v3443_v26 = vld [vmem:[%s6675_s1 + $0x518] sm:$0xf0] }
  0xdb   :  { %1940 = vmatpush.bf16.msra.mxu1 %v2966_v54  ;;  %1953 = vmatpush.bf16.msra.mxu2 %v3094_v55  ;;  %v3395_v54 = vld [vmem:[%s6675_s1 + $0x4b8] sm:$0xf0]  ;;  %v4348_v55 = vld [vmem:[%s6675_s1 + $0x5ac] sm:$0xf] }
  0xdc   :  { %1966 = vmatpush.bf16.msra.mxu3 %v3222_v60  ;;  %v4412_v60 = vld [vmem:[%s6675_s1 + $0x7ac] sm:$0xf]  ;;  %v3398_v61 = vor.u32 %v4316_v53, %v3395_v54  ;;  %v3526_v62 = vor.u32 %v4348_v55, %v3523_v57  ;;  %v3459_v53 = vld [vmem:[%s6675_s1 + $0x538] sm:$0xf0] }
  0xdd   :  { %1928 = vmatpush.bf16.msra.mxu0 %v2822_v2  ;;  %v4376_v2 = vld [vmem:[%s6675_s1 + $0x68c] sm:$0xf]  ;;  %v3587_v55 = vld [vmem:[%s6675_s1 + $0x638] sm:$0xf0] }
  0xde   :  { %v3638_v9 = vor.u32 %v4376_v2, %v3635_v3  ;;  %v4300_v47 = vld [vmem:[%s6675_s1 + $0x42c] sm:$0xf]  ;;  %v3715_v57 = vld [vmem:[%s6675_s1 + $0x738] sm:$0xf0] }
  0xdf   :  { %1941 = vmatpush.bf16.msra.mxu1 %v2950_v5  ;;  %1954 = vmatpush.bf16.msra.mxu2 %v3078_v6  ;;  %v3763_v5 = vld [vmem:[%s6675_s1 + $0x798] sm:$0xf0]  ;;  %v3382_v6 = vor.u32 %v4312_v0, %v3379_v1  ;;  %v4364_v54 = vld [vmem:[%s6675_s1 + $0x62c] sm:$0xf]  ;;  %v3334_v59 = vor.u32 %v4300_v47, %v3331_v48  ;;  %v3905_v47 = vld [vmem:[%s6678_s3 + $0xb0] sm:$0xf] }
  0xe0   :  { %1967 = vmatpush.bf16.msra.mxu3 %v3206_v11  ;;  %v3363_v11 = vld [vmem:[%s6675_s1 + $0x478] sm:$0xf0]  ;;  %v3766_v14 = vor.u32 %v4408_v4, %v3763_v5  ;;  %v3873_v4 = vld [vmem:[%s6678_s3 + $0x70] sm:$0xf]  ;;  %v4438_v5 = vld [vmem:[%s6678_s3 + $0x74] sm:$0xf0] }
  0xe1   :  { %1929 = vmatpush.bf16.msra.mxu0 %v2806_v23  ;;  %v6075_v7 = vpop.f32.mrf.mxu0  ;;  %v3747_v23 = vld [vmem:[%s6675_s1 + $0x778] sm:$0xf0]  ;;  %v3366_v25 = vor.u32 %v4308_v10, %v3363_v11  ;;  %v4454_v10 = vld [vmem:[%s6678_s3 + $0xf4] sm:$0xf0]  ;;  %v3874_v15 = vor.u32 %v4438_v5, %v3873_v4  ;;  %v3889_v4 = vld [vmem:[%s6678_s3 + $0x90] sm:$0xf] }
  0xe2   :  { %v3699_v3 = vld [vmem:[%s6675_s1 + $0x718] sm:$0xf0] }
  0xe3   :  { %1942 = vmatpush.bf16.msra.mxu1 %v2934_v29  ;;  %1955 = vmatpush.bf16.msra.mxu2 %v3062_v30  ;;  %v6086_v13 = vpop.f32.mrf.mxu1  ;;  %v4304_v29 = vld [vmem:[%s6675_s1 + $0x44c] sm:$0xf]  ;;  %v3347_v30 = vld [vmem:[%s6675_s1 + $0x458] sm:$0xf0] }
  0xe4   :  { %1968 = vmatpush.bf16.msra.mxu3 %v3190_v32  ;;  %1930 = vmatmul.bf16.vlgmr.msra.gmra.mxu0 %v4864_v19  ;;  %v4344_v19 = vld [vmem:[%s6675_s1 + $0x58c] sm:$0xf]  ;;  %v3750_v32 = vor.u32 %v4404_v21, %v3747_v23  ;;  %v4436_v21 = vld [vmem:[%s6678_s3 + $0x64] sm:$0xf0]  ;;  %v3929_v23 = vld [vmem:[%s6678_s3 + $0xe0] sm:$0xf] }
  0xe5   :  { %1974 = vmatpush.bf16.msrb.mxu0 %v3430_v33  ;;  %v3475_v33 = vld [vmem:[%s6675_s1 + $0x558] sm:$0xf0] }
  0xe6   :  { %1956 = vmatmul.bf16.vlgmr.msra.gmra.mxu2 %v4862_v18  ;;  %v3779_v18 = vld [vmem:[%s6675_s1 + $0x7b8] sm:$0xf0]  ;;  %1943 = vmatmul.bf16.vlgmr.msra.gmra.mxu1 %v4868_v22  ;;  %v3478_v45 = vor.u32 %v4336_v24, %v3475_v33  ;;  %v3921_v24 = vld [vmem:[%s6678_s3 + $0xd0] sm:$0xf] }
  0xe7   :  { %1987 = vmatpush.bf16.msrb.mxu1 %v3558_v34  ;;  %2000 = vmatpush.bf16.msrb.mxu2 %v3686_v35  ;;  %v3507_v22 = vld [vmem:[%s6675_s1 + $0x598] sm:$0xf0]  ;;  %v4368_v34 = vld [vmem:[%s6675_s1 + $0x64c] sm:$0xf] }
  0xe8   :  { %2013 = vmatpush.bf16.msrb.mxu3 %v3814_v40  ;;  %v3510_v8 = vor.u32 %v4344_v19, %v3507_v22  ;;  %v3603_v35 = vld [vmem:[%s6675_s1 + $0x658] sm:$0xf0]  ;;  %v3350_v40 = vor.u32 %v4304_v29, %v3347_v30  ;;  %v4360_v19 = vld [vmem:[%s6675_s1 + $0x60c] sm:$0xf]  ;;  %v3857_v29 = vld [vmem:[%s6678_s3 + $0x50] sm:$0xf] }
  0xe9   :  { %1969 = vmatmul.bf16.vlgmr.msra.gmra.mxu3 %v4866_v20  ;;  %1975 = vmatpush.bf16.msrb.mxu0 %v3414_v49  ;;  %v3782_v20 = vor.u32 %v4412_v60, %v3779_v18  ;;  %v6112_v31 = vpop.f32.mrf.mxu2  ;;  %v1725_v43 = vpop.f32.mrf.mxu0  ;;  %v3606_v46 = vor.u32 %v4368_v34, %v3603_v35  ;;  %v4332_v49 = vld [vmem:[%s6675_s1 + $0x52c] sm:$0xf]  ;;  %v4434_v30 = vld [vmem:[%s6678_s3 + $0x54] sm:$0xf0]  ;;  %v3913_v34 = vld [vmem:[%s6678_s3 + $0xc0] sm:$0xf] }
  0xea   :  { %v4296_v60 = vld [vmem:[%s6675_s1 + $0x40c] sm:$0xf]  ;;  %v3462_v18 = vor.u32 %v4332_v49, %v3459_v53  ;;  %v4001_v35 = vld [vmem:[%s6678_s3 + $0x170] sm:$0xf]  ;;  %v4468_v53 = vld [vmem:[%s6678_s3 + $0x164] sm:$0xf0] }
  0xeb   :  { %1988 = vmatpush.bf16.msrb.mxu1 %v3542_v50  ;;  %2001 = vmatpush.bf16.msrb.mxu2 %v3670_v51  ;;  %v1738_v50 = vpop.f32.mrf.mxu1  ;;  %v3734_v51 = vor.u32 %v4400_v37, %v3731_v39  ;;  %v4392_v22 = vld [vmem:[%s6675_s1 + $0x70c] sm:$0xf] }
  0xec   :  { %2014 = vmatpush.bf16.msrb.mxu3 %v3798_v56  ;;  %v6123_v36 = vpop.f32.mrf.mxu3  ;;  %v4396_v56 = vld [vmem:[%s6675_s1 + $0x72c] sm:$0xf]  ;;  %v4446_v50 = vld [vmem:[%s6678_s3 + $0xb4] sm:$0xf0] }
  0xed   :  { %1976 = vmatpush.bf16.msrb.mxu0 %v3398_v61  ;;  %v3590_v61 = vor.u32 %v4364_v54, %v3587_v55  ;;  %v3718_v1 = vor.u32 %v4396_v56, %v3715_v57  ;;  %v3906_v57 = vor.u32 %v4446_v50, %v3905_v47  ;;  %v4458_v47 = vld [vmem:[%s6678_s3 + $0x114] sm:$0xf0]  ;;  %v3859_v50 = vld [vmem:[%s6678_s3 + $0x58] sm:$0xf0] }
  0xef   :  { %1989 = vmatpush.bf16.msrb.mxu1 %v3526_v62  ;;  %2002 = vmatpush.bf16.msrb.mxu2 %v3654_v63  ;;  %v3315_v62 = vld [vmem:[%s6675_s1 + $0x418] sm:$0xf0]  ;;  %v4328_v63 = vld [vmem:[%s6675_s1 + $0x50c] sm:$0xf] }
  0xf0   :  { %2015 = vmatpush.bf16.msrb.mxu3 %v3782_v20  ;;  %v3571_v20 = vld [vmem:[%s6675_s1 + $0x618] sm:$0xf0]  ;;  %v3446_v11 = vor.u32 %v4328_v63, %v3443_v26  ;;  %v3985_v63 = vld [vmem:[%s6678_s3 + $0x150] sm:$0xf]  ;;  %v4466_v26 = vld [vmem:[%s6678_s3 + $0x154] sm:$0xf0] }
  0xf1   :  { %1977 = vmatpush.bf16.msrb.mxu0 %v3382_v6  ;;  %v1751_v0 = vpop.f32.mrf.mxu2  ;;  %v1724_v6 = vadd.f32 %v6075_v7, %v295_v58  ;;  %v3574_v12 = vor.u32 %v4360_v19, %v3571_v20  ;;  %v3833_v58 = vld [vmem:[%s6678_s3 + $0x20] sm:$0xf] }
  0xf2   :  { %v3986_v0 = vor.u32 %v4466_v26, %v3985_v63  ;;  %v4447_v63 = vld [vmem:[%s6678_s3 + $0xc4] sm:$0xf]  ;;  %v3915_v26 = vld [vmem:[%s6678_s3 + $0xc8] sm:$0xf0] }
  0xf3   :  { %1990 = vmatpush.bf16.msrb.mxu1 %v3510_v8  ;;  %2003 = vmatpush.bf16.msrb.mxu2 %v3638_v9  ;;  %v3318_v8 = vor.u32 %v4296_v60, %v3315_v62  ;;  %v3937_v9 = vld [vmem:[%s6678_s3 + $0xf0] sm:$0xf]  ;;  %v1737_v7 = vadd.f32 %v6086_v13, %v1724_v6  ;;  %v3866_v13 = vor.u32 %v4436_v21, %v3865_v17  ;;  %v3897_v60 = vld [vmem:[%s6678_s3 + $0xa0] sm:$0xf]  ;;  %v4442_v6 = vld [vmem:[%s6678_s3 + $0x94] sm:$0xf0] }
  0xf4   :  { %2016 = vmatpush.bf16.msrb.mxu3 %v3766_v14  ;;  %v1764_v2 = vpop.f32.mrf.mxu3  ;;  %v3702_v14 = vor.u32 %v4392_v22, %v3699_v3  ;;  %v3938_v16 = vor.u32 %v4454_v10, %v3937_v9  ;;  %v4426_v3 = vld [vmem:[%s6678_s3 + $0x14] sm:$0xf0]  ;;  %v4464_v9 = vld [vmem:[%s6678_s3 + $0x144] sm:$0xf0]  ;;  %v4437_v21 = vld [vmem:[%s6678_s3 + $0x74] sm:$0xf] }
  0xf5   :  { %1978 = vmatpush.bf16.msrb.mxu0 %v3366_v25  ;;  %v4452_v25 = vld [vmem:[%s6678_s3 + $0xe4] sm:$0xf0]  ;;  %v3825_v2 = vld [vmem:[%s6678_s3 + $0x10] sm:$0xf] }
  0xf6   :  { %v4440_v17 = vld [vmem:[%s6678_s3 + $0x84] sm:$0xf0] }
  0xf7   :  { %1991 = vmatpush.bf16.msrb.mxu1 %v3494_v27  ;;  %2004 = vmatpush.bf16.msrb.mxu2 %v3622_v28  ;;  %v3930_v27 = vor.u32 %v4452_v25, %v3929_v23  ;;  %v1750_v28 = vadd.f32 %v6112_v31, %v1737_v7  ;;  %v3858_v31 = vor.u32 %v4434_v30, %v3857_v29  ;;  %v3881_v7 = vld [vmem:[%s6678_s3 + $0x80] sm:$0xf]  ;;  %v3875_v25 = vld [vmem:[%s6678_s3 + $0x78] sm:$0xf0]  ;;  %v4453_v29 = vld [vmem:[%s6678_s3 + $0xf4] sm:$0xf] }
  0xf8   :  { %2017 = vmatpush.bf16.msrb.mxu3 %v3750_v32  ;;  %v3939_v30 = vld [vmem:[%s6678_s3 + $0xf8] sm:$0xf0] }
  0xf9   :  { %1979 = vmatpush.bf16.msrb.mxu0 %v3350_v40  ;;  %v1763_v32 = vadd.f32 %v6123_v36, %v1750_v28  ;;  %v4470_v36 = vld [vmem:[%s6678_s3 + $0x174] sm:$0xf0] }
  0xfa   :  { %v4002_v37 = vor.u32 %v4470_v36, %v4001_v35  ;;  %v4462_v28 = vld [vmem:[%s6678_s3 + $0x134] sm:$0xf0]  ;;  %v3961_v35 = vld [vmem:[%s6678_s3 + $0x120] sm:$0xf]  ;;  %v4451_v36 = vld [vmem:[%s6678_s3 + $0xe4] sm:$0xf] }
  0xfb   :  { %1992 = vmatpush.bf16.msrb.mxu1 %v3478_v45  ;;  %2005 = vmatpush.bf16.msrb.mxu2 %v3606_v46  ;;  %v3841_v45 = vld [vmem:[%s6678_s3 + $0x30] sm:$0xf]  ;;  %v4430_v46 = vld [vmem:[%s6678_s3 + $0x34] sm:$0xf0] }
  0xfc   :  { %2018 = vmatpush.bf16.msrb.mxu3 %v3734_v51  ;;  %v3993_v51 = vld [vmem:[%s6678_s3 + $0x160] sm:$0xf]  ;;  %v3842_v55 = vor.u32 %v4430_v46, %v3841_v45  ;;  %v3953_v46 = vld [vmem:[%s6678_s3 + $0x110] sm:$0xf] }
  0xfd   :  { %1980 = vmatpush.bf16.msrb.mxu0 %v3334_v59  ;;  %v3994_v54 = vor.u32 %v4468_v53, %v3993_v51  ;;  %v4428_v59 = vld [vmem:[%s6678_s3 + $0x24] sm:$0xf0]  ;;  %v4449_v51 = vld [vmem:[%s6678_s3 + $0xd4] sm:$0xf]  ;;  %v3954_v53 = vor.u32 %v4458_v47, %v3953_v46  ;;  %v3883_v46 = vld [vmem:[%s6678_s3 + $0x88] sm:$0xf0] }
  0xff   :  { %1993 = vmatpush.bf16.msrb.mxu1 %v3462_v18  ;;  %2006 = vmatpush.bf16.msrb.mxu2 %v3590_v61  ;;  %v4444_v61 = vld [vmem:[%s6678_s3 + $0xa4] sm:$0xf0] }
 0x100   :  { %2019 = vmatpush.bf16.msrb.mxu3 %v3718_v1  ;;  %v3834_v1 = vor.u32 %v4428_v59, %v3833_v58  ;;  %v3898_v22 = vor.u32 %v4444_v61, %v3897_v60  ;;  %v4003_v58 = vld [vmem:[%s6678_s3 + $0x178] sm:$0xf0]  ;;  %v3851_v61 = vld [vmem:[%s6678_s3 + $0x48] sm:$0xf0] }
 0x101   :  { %1981 = vmatpush.bf16.msrb.mxu0 %v3318_v8  ;;  %v1775_v40 = vpop.f32.mrf.mxu0  ;;  %v3977_v8 = vld [vmem:[%s6678_s3 + $0x140] sm:$0xf] }
 0x102   :  { %v1776_v48 = vadd.f32 %v1775_v40, %v1763_v32  ;;  %v3978_v10 = vor.u32 %v4464_v9, %v3977_v8  ;;  %v2026_v32 = vmax.f32 %v5925_v52, 0.0  ;;  %v4460_v52 = vld [vmem:[%s6678_s3 + $0x124] sm:$0xf0]  ;;  %v3995_v8 = vld [vmem:[%s6678_s3 + $0x168] sm:$0xf0] }
 0x103   :  { %1994 = vmatpush.bf16.msrb.mxu1 %v3446_v11  ;;  %2007 = vmatpush.bf16.msrb.mxu2 %v3574_v12  ;;  %v1788_v49 = vpop.f32.mrf.mxu1  ;;  %v3826_v12 = vor.u32 %v4426_v3, %v3825_v2  ;;  %v4445_v2 = vld [vmem:[%s6678_s3 + $0xb4] sm:$0xf] }
 0x104   :  { %2020 = vmatpush.bf16.msrb.mxu3 %v3702_v14  ;;  %1982 = vmatmul.bf16.vlgmr.msrb.gmra.mxu0 %v5026_v41  ;;  %v4450_v41 = vld [vmem:[%s6678_s3 + $0xd4] sm:$0xf0]  ;;  %v1789_v56 = vadd.f32 %v1788_v49, %v1776_v48  ;;  %v3817_v14 = vld [vmem:[%s6678_s3] sm:$0xf]  ;;  %v4433_v49 = vld [vmem:[%s6678_s3 + $0x54] sm:$0xf] }
 0x105   :  { %2424 = vmatpush.bf16.msra.mxu0 %v3874_v15  ;;  %v3922_v33 = vor.u32 %v4450_v41, %v3921_v24  ;;  %v4424_v15 = vld [vmem:[%s6678_s3 + $0x4] sm:$0xf0]  ;;  %v3862_v59 = vor.u32 %v4433_v49, %v3859_v50  ;;  %v4459_v50 = vld [vmem:[%s6678_s3 + $0x124] sm:$0xf] }
 0x106   :  { %1995 = vmatmul.bf16.vlgmr.msrb.gmra.mxu1 %v5030_v44  ;;  %2008 = vmatmul.bf16.vlgmr.msrb.gmra.mxu2 %v5018_v38  ;;  %v3849_v38 = vld [vmem:[%s6678_s3 + $0x40] sm:$0xf]  ;;  %v4432_v44 = vld [vmem:[%s6678_s3 + $0x44] sm:$0xf0] }
 0x107   :  { %2437 = vmatpush.bf16.msra.mxu1 %v3938_v16  ;;  %2021 = vmatmul.bf16.vlgmr.msrb.gmra.mxu3 %v5028_v42  ;;  %v4448_v42 = vld [vmem:[%s6678_s3 + $0xc4] sm:$0xf0]  ;;  %v3850_v39 = vor.u32 %v4432_v44, %v3849_v38  ;;  %v3890_v16 = vor.u32 %v4442_v6, %v3889_v4  ;;  %v3878_v38 = vor.u32 %v4437_v21, %v3875_v25  ;;  %v4435_v44 = vld [vmem:[%s6678_s3 + $0x64] sm:$0xf]  ;;  %v3907_v4 = vld [vmem:[%s6678_s3 + $0xb8] sm:$0xf0] }
 0x108   :  { %v3914_v43 = vor.u32 %v4448_v42, %v3913_v34  ;;  %2450 = vmatpush.bf16.msra.mxu2 %v4002_v37  ;;  %v3942_v34 = vor.u32 %v4453_v29, %v3939_v30  ;;  %v3867_v42 = vld [vmem:[%s6678_s3 + $0x68] sm:$0xf0]  ;;  %v4467_v6 = vld [vmem:[%s6678_s3 + $0x164] sm:$0xf]  ;;  %v3987_v21 = vld [vmem:[%s6678_s3 + $0x158] sm:$0xf0] }
 0x109   :  { %2425 = vmatpush.bf16.msra.mxu0 %v3866_v13  ;;  %v1801_v18 = vpop.f32.mrf.mxu2  ;;  %v1777_v20 = vpop.f32.mrf.mxu0  ;;  %v3931_v37 = vld [vmem:[%s6678_s3 + $0xe8] sm:$0xf0]  ;;  %v3870_v45 = vor.u32 %v4435_v44, %v3867_v42  ;;  %v3998_v9 = vor.u32 %v4467_v6, %v3995_v8  ;;  %v3827_v29 = vld [vmem:[%s6678_s3 + $0x18] sm:$0xf0]  ;;  %v4441_v30 = vld [vmem:[%s6678_s3 + $0x94] sm:$0xf] }
 0x10a   :  { %v1802_v19 = vadd.f32 %v1801_v18, %v1789_v56  ;;  %v3934_v48 = vor.u32 %v4451_v36, %v3931_v37  ;;  %v4456_v56 = vld [vmem:[%s6678_s3 + $0x104] sm:$0xf0]  ;;  %v4431_v18 = vld [vmem:[%s6678_s3 + $0x44] sm:$0xf]  ;;  %v4429_v20 = vld [vmem:[%s6678_s3 + $0x34] sm:$0xf] }
 0x10b   :  { %2438 = vmatpush.bf16.msra.mxu1 %v3930_v27  ;;  %v1790_v5 = vpop.f32.mrf.mxu1  ;;  %v3969_v27 = vld [vmem:[%s6678_s3 + $0x130] sm:$0xf]  ;;  %v3819_v36 = vld [vmem:[%s6678_s3 + $0x8] sm:$0xf0]  ;;  %v4461_v37 = vld [vmem:[%s6678_s3 + $0x134] sm:$0xf] }
 0x10c   :  { %2451 = vmatpush.bf16.msra.mxu2 %v3994_v54  ;;  %v1814_v62 = vpop.f32.mrf.mxu3  ;;  %v3970_v24 = vor.u32 %v4462_v28, %v3969_v27  ;;  %v3923_v54 = vld [vmem:[%s6678_s3 + $0xd8] sm:$0xf0]  ;;  %v4425_v28 = vld [vmem:[%s6678_s3 + $0x14] sm:$0xf] }
 0x10d   :  { %2426 = vmatpush.bf16.msra.mxu0 %v3858_v31  ;;  %v1815_v11 = vadd.f32 %v1814_v62, %v1802_v19  ;;  %v3818_v31 = vor.u32 %v4424_v15, %v3817_v14  ;;  %v3926_v60 = vor.u32 %v4449_v51, %v3923_v54  ;;  %v3918_v19 = vor.u32 %v4447_v63, %v3915_v26  ;;  %v3835_v14 = vld [vmem:[%s6678_s3 + $0x28] sm:$0xf0]  ;;  %v4443_v15 = vld [vmem:[%s6678_s3 + $0xa4] sm:$0xf] }
 0x10e   :  { %v3830_v44 = vor.u32 %v4425_v28, %v3827_v29  ;;  %v3963_v51 = vld [vmem:[%s6678_s3 + $0x128] sm:$0xf0]  ;;  %v4455_v63 = vld [vmem:[%s6678_s3 + $0x104] sm:$0xf]  ;;  %v4476_v28 = vld [vmem:[%s6678_s3 + $0x1a4] sm:$0xf0] }
 0x10f   :  { %2439 = vmatpush.bf16.msra.mxu1 %v3922_v33  ;;  %v2027_v41 = vmax.f32 %v1815_v11, 0.0  ;;  %v3882_v33 = vor.u32 %v4440_v17, %v3881_v7  ;;  %v3910_v11 = vor.u32 %v4445_v2, %v3907_v4  ;;  %v4465_v17 = vld [vmem:[%s6678_s3 + $0x154] sm:$0xf]  ;;  %v3947_v26 = vld [vmem:[%s6678_s3 + $0x108] sm:$0xf0] }
 0x110   :  { %2452 = vmatpush.bf16.msra.mxu2 %v3986_v0  ;;  %v3990_v25 = vor.u32 %v4465_v17, %v3987_v21  ;;  %v4049_v2 = vld [vmem:[%s6678_s3 + $0x1d0] sm:$0xf] }
 0x111   :  { %2427 = vmatpush.bf16.msra.mxu0 %v3850_v39  ;;  %v1803_v23 = vpop.f32.mrf.mxu2  ;;  %v3962_v39 = vor.u32 %v4460_v52, %v3961_v35  ;;  %v6345_v40 = vpack.c.bf16 %v2027_v41, %v2027_v41  ;;  %v3891_v41 = vld [vmem:[%s6678_s3 + $0x98] sm:$0xf0]  ;;  %v4423_v35 = vld [vmem:[%s6678_s3 + $0x4] sm:$0xf] }
 0x112   :  { %v3894_v52 = vor.u32 %v4441_v30, %v3891_v41 }
 0x113   :  { %2440 = vmatpush.bf16.msra.mxu1 %v3914_v43  ;;  %v6347_v43 = vpack.c.bf16 %v2026_v32, %v2026_v32  ;;  %v4463_v32 = vld [vmem:[%s6678_s3 + $0x144] sm:$0xf] }
 0x114   :  { %2453 = vmatpush.bf16.msra.mxu2 %v3978_v10  ;;  %v1816_v13 = vpop.f32.mrf.mxu3 }
 0x115   :  { %2428 = vmatpush.bf16.msra.mxu0 %v3842_v55  ;;  %v3945_v55 = vld [vmem:[%s6678_s3 + $0x100] sm:$0xf] }
 0x116   :  { %v3946_v62 = vor.u32 %v4456_v56, %v3945_v55  ;;  %v3822_v55 = vor.u32 %v4423_v35, %v3819_v36  ;;  %v4486_v56 = vld [vmem:[%s6678_s3 + $0x1f4] sm:$0xf0]  ;;  %v4485_v35 = vld [vmem:[%s6678_s3 + $0x1f4] sm:$0xf] }
 0x117   :  { %2441 = vmatpush.bf16.msra.mxu1 %v3906_v57  ;;  %v4469_v57 = vld [vmem:[%s6678_s3 + $0x174] sm:$0xf] }
 0x118   :  { %2454 = vmatpush.bf16.msra.mxu2 %v3970_v24  ;;  %v4006_v0 = vor.u32 %v4469_v57, %v4003_v58 }
 0x119   :  { %2429 = vmatpush.bf16.msra.mxu0 %v3834_v1  ;;  %v3854_v1 = vor.u32 %v4431_v18, %v3851_v61  ;;  %v3955_v18 = vld [vmem:[%s6678_s3 + $0x118] sm:$0xf0] }
 0x11b   :  { %2442 = vmatpush.bf16.msra.mxu1 %v3898_v22  ;;  %v3843_v22 = vld [vmem:[%s6678_s3 + $0x38] sm:$0xf0] }
 0x11c   :  { %2455 = vmatpush.bf16.msra.mxu2 %v3962_v39  ;;  %v3846_v10 = vor.u32 %v4429_v20, %v3843_v22  ;;  %v3971_v39 = vld [vmem:[%s6678_s3 + $0x138] sm:$0xf0]  ;;  %v4057_v20 = vld [vmem:[%s6678_s3 + $0x1e0] sm:$0xf] }
 0x11d   :  { %2430 = vmatpush.bf16.msra.mxu0 %v3826_v12  ;;  %v4427_v12 = vld [vmem:[%s6678_s3 + $0x24] sm:$0xf] }
 0x11e   :  { %v3838_v13 = vor.u32 %v4427_v12, %v3835_v14 }
 0x11f   :  { %2443 = vmatpush.bf16.msra.mxu1 %v3890_v16  ;;  %v3899_v16 = vld [vmem:[%s6678_s3 + $0xa8] sm:$0xf0] }
 0x120   :  { %2456 = vmatpush.bf16.msra.mxu2 %v3954_v53  ;;  %v3902_v27 = vor.u32 %v4443_v15, %v3899_v16  ;;  %v4065_v53 = vld [vmem:[%s6678_s3 + $0x1f0] sm:$0xf] }
 0x121   :  { %2431 = vmatpush.bf16.msra.mxu0 %v3818_v31  ;;  %v1827_v3 = vpop.f32.mrf.mxu0  ;;  %v4066_v58 = vor.u32 %v4486_v56, %v4065_v53  ;;  %v4033_v16 = vld [vmem:[%s6678_s3 + $0x1b0] sm:$0xf] }
 0x123   :  { %2444 = vmatpush.bf16.msra.mxu1 %v3882_v33  ;;  %v6405_v5 = vpop.f32.mrf.mxu1  ;;  %v3979_v33 = vld [vmem:[%s6678_s3 + $0x148] sm:$0xf0]  ;;  %2463 = vmatpush.bf16.msra.mxu3 %v4066_v58 }
 0x124   :  { %2432 = vmatmul.bf16.vlgmr.msra.gmra.mxu0 %v6347_v43  ;;  %2457 = vmatpush.bf16.msra.mxu2 %v3946_v62 }
 0x125   :  { %2476 = vmatpush.bf16.msrb.mxu0 %v3878_v38  ;;  %v3982_v38 = vor.u32 %v4463_v32, %v3979_v33  ;;  %v4474_v32 = vld [vmem:[%s6678_s3 + $0x194] sm:$0xf0] }
 0x126   :  { %2445 = vmatmul.bf16.vlgmr.msra.gmra.mxu1 %v6345_v40 }
 0x127   :  { %2489 = vmatpush.bf16.msrb.mxu1 %v3942_v34  ;;  %v6452_v34 = vld [vmem:[%s6677_s2] sm:$0xf] }
 0x128   :  { %2502 = vmatpush.bf16.msrb.mxu2 %v4006_v0  ;;  %v296_v42 = vperm.slane %v6452_v34, 2 }
 0x129   :  { %2477 = vmatpush.bf16.msrb.mxu0 %v3870_v45  ;;  %v1853_v7 = vpop.f32.mrf.mxu2  ;;  %v1829_v24 = vpop.f32.mrf.mxu0  ;;  %v4439_v45 = vld [vmem:[%s6678_s3 + $0x84] sm:$0xf] }
 0x12a   :  { %v1828_v54 = vadd.f32 %v1827_v3, %v296_v42  ;;  %v3886_v57 = vor.u32 %v4439_v45, %v3883_v46 }
 0x12b   :  { %2490 = vmatpush.bf16.msrb.mxu1 %v3934_v48  ;;  %v1842_v31 = vpop.f32.mrf.mxu1  ;;  %v3974_v48 = vor.u32 %v4461_v37, %v3971_v39  ;;  %v4483_v37 = vld [vmem:[%s6678_s3 + $0x1e4] sm:$0xf]  ;;  %v4059_v39 = vld [vmem:[%s6678_s3 + $0x1e8] sm:$0xf0] }
 0x12c   :  { %2503 = vmatpush.bf16.msrb.mxu2 %v3998_v9  ;;  %v1866_v23 = vpop.f32.mrf.mxu3  ;;  %v1841_v61 = vadd.f32 %v6405_v5, %v1828_v54  ;;  %v4041_v9 = vld [vmem:[%s6678_s3 + $0x1c0] sm:$0xf]  ;;  %v4017_v31 = vld [vmem:[%s6678_s3 + $0x190] sm:$0xf]  ;;  %v4062_v46 = vor.u32 %v4483_v37, %v4059_v39  ;;  %v4479_v54 = vld [vmem:[%s6678_s3 + $0x1c4] sm:$0xf] }
 0x12d   :  { %2478 = vmatpush.bf16.msrb.mxu0 %v3862_v59  ;;  %v3966_v59 = vor.u32 %v4459_v50, %v3963_v51  ;;  %v4018_v33 = vor.u32 %v4474_v32, %v4017_v31  ;;  %v4502_v37 = vld [vmem:[%s6681_s5 + $0x78] sm:$0xff]  ;;  %v4493_v39 = vld [vmem:[%s6681_s5 + $0x30] sm:$0xff] }
 0x12e   :  { %v1854_v0 = vadd.f32 %v1853_v7, %v1841_v61  ;;  %v4478_v7 = vld [vmem:[%s6678_s3 + $0x1b4] sm:$0xf0] }
 0x12f   :  { %2491 = vmatpush.bf16.msrb.mxu1 %v3926_v60  ;;  %v4457_v60 = vld [vmem:[%s6678_s3 + $0x114] sm:$0xf] }
 0x130   :  { %2504 = vmatpush.bf16.msrb.mxu2 %v3990_v25  ;;  %v3958_v62 = vor.u32 %v4457_v60, %v3955_v18  ;;  %v4034_v25 = vor.u32 %v4478_v7, %v4033_v16  ;;  %v4035_v60 = vld [vmem:[%s6678_s3 + $0x1b8] sm:$0xf0]  ;;  %v297_v18 = vperm.slane %v6452_v34, 3 }
 0x131   :  { %2479 = vmatpush.bf16.msrb.mxu0 %v3854_v1  ;;  %v1855_v47 = vpop.f32.mrf.mxu2  ;;  %v3950_v1 = vor.u32 %v4455_v63, %v3947_v26  ;;  %v4027_v63 = vld [vmem:[%s6678_s3 + $0x1a8] sm:$0xf0]  ;;  %v4019_v34 = vld [vmem:[%s6678_s3 + $0x198] sm:$0xf0] }
 0x133   :  { %2492 = vmatpush.bf16.msrb.mxu1 %v3918_v19  ;;  %v1867_v19 = vadd.f32 %v1866_v23, %v1854_v0 }
 0x134   :  { %2505 = vmatpush.bf16.msrb.mxu2 %v3982_v38  ;;  %v1868_v49 = vpop.f32.mrf.mxu3  ;;  %v4009_v38 = vld [vmem:[%s6678_s3 + $0x180] sm:$0xf] }
 0x135   :  { %2480 = vmatpush.bf16.msrb.mxu0 %v3846_v10  ;;  %v4480_v10 = vld [vmem:[%s6678_s3 + $0x1c4] sm:$0xf0]  ;;  %v4051_v49 = vld [vmem:[%s6678_s3 + $0x1d8] sm:$0xf0] }
 0x136   :  { %v4042_v12 = vor.u32 %v4480_v10, %v4041_v9 }
 0x137   :  { %2493 = vmatpush.bf16.msrb.mxu1 %v3910_v11 }
 0x138   :  { %2506 = vmatpush.bf16.msrb.mxu2 %v3974_v48  ;;  %v4481_v48 = vld [vmem:[%s6678_s3 + $0x1d4] sm:$0xf] }
 0x139   :  { %2481 = vmatpush.bf16.msrb.mxu0 %v3838_v13  ;;  %v4054_v50 = vor.u32 %v4481_v48, %v4051_v49  ;;  %v4491_v48 = vld [vmem:[%s6681_s5 + $0x20] sm:$0xff]  ;;  %v4490_v49 = vld [vmem:[%s6681_s5 + $0x18] sm:$0xff] }
 0x13b   :  { %2494 = vmatpush.bf16.msrb.mxu1 %v3902_v27  ;;  %v4025_v27 = vld [vmem:[%s6678_s3 + $0x1a0] sm:$0xf] }
 0x13c   :  { %2507 = vmatpush.bf16.msrb.mxu2 %v3966_v59  ;;  %v4026_v24 = vor.u32 %v4476_v28, %v4025_v27  ;;  %v4477_v59 = vld [vmem:[%s6678_s3 + $0x1b4] sm:$0xf] }
 0x13d   :  { %2482 = vmatpush.bf16.msrb.mxu0 %v3830_v44  ;;  %v4472_v44 = vld [vmem:[%s6678_s3 + $0x184] sm:$0xf0]  ;;  %v4038_v61 = vor.u32 %v4477_v59, %v4035_v60  ;;  %v4498_v59 = vld [vmem:[%s6681_s5 + $0x58] sm:$0xff]  ;;  %v4497_v60 = vld [vmem:[%s6681_s5 + $0x50] sm:$0xff] }
 0x13e   :  { %v4010_v42 = vor.u32 %v4472_v44, %v4009_v38 }
 0x13f   :  { %2495 = vmatpush.bf16.msrb.mxu1 %v3894_v52  ;;  %v4067_v52 = vld [vmem:[%s6678_s3 + $0x1f8] sm:$0xf0] }
 0x140   :  { %2508 = vmatpush.bf16.msrb.mxu2 %v3958_v62  ;;  %v4070_v36 = vor.u32 %v4485_v35, %v4067_v52  ;;  %v4475_v62 = vld [vmem:[%s6678_s3 + $0x1a4] sm:$0xf] }
 0x141   :  { %2483 = vmatpush.bf16.msrb.mxu0 %v3822_v55  ;;  %v1879_v3 = vpop.f32.mrf.mxu0  ;;  %v4043_v55 = vld [vmem:[%s6678_s3 + $0x1c8] sm:$0xf0] }
 0x142   :  { %v1880_v4 = vadd.f32 %v1879_v3, %v1867_v19  ;;  %v4473_v19 = vld [vmem:[%s6678_s3 + $0x194] sm:$0xf] }
 0x143   :  { %2496 = vmatpush.bf16.msrb.mxu1 %v3886_v57  ;;  %v1892_v5 = vpop.f32.mrf.mxu1  ;;  %v4046_v57 = vor.u32 %v4479_v54, %v4043_v55  ;;  %v4488_v55 = vld [vmem:[%s6681_s5 + $0x8] sm:$0xff] }
 0x144   :  { %2484 = vmatmul.bf16.vlgmr.msrb.gmra.mxu0 %v6347_v43  ;;  %v4484_v43 = vld [vmem:[%s6678_s3 + $0x1e4] sm:$0xf0]  ;;  %2509 = vmatpush.bf16.msrb.mxu2 %v3950_v1  ;;  %v1893_v8 = vadd.f32 %v1892_v5, %v1880_v4  ;;  %v4030_v1 = vor.u32 %v4475_v62, %v4027_v63  ;;  %v4510_v62 = vld [vmem:[%s6682_s7 + $0x38] sm:$0xff]  ;;  %v4509_v63 = vld [vmem:[%s6682_s7 + $0x30] sm:$0xff] }
 0x145   :  { %v4058_v22 = vor.u32 %v4484_v43, %v4057_v20  ;;  %v4022_v43 = vor.u32 %v4473_v19, %v4019_v34 }
 0x146   :  { %2497 = vmatmul.bf16.vlgmr.msrb.gmra.mxu1 %v6345_v40  ;;  %v4482_v40 = vld [vmem:[%s6678_s3 + $0x1d4] sm:$0xf0] }
 0x147   :  { %2464 = vmatpush.bf16.msra.mxu3 %v4058_v22  ;;  %v4050_v6 = vor.u32 %v4482_v40, %v4049_v2  ;;  %v4471_v22 = vld [vmem:[%s6678_s3 + $0x184] sm:$0xf]  ;;  %v4011_v2 = vld [vmem:[%s6678_s3 + $0x188] sm:$0xf0]  ;;  %2677 = vmatpush.bf16.msra.mxu1 %v4502_v37 }
 0x148   :  { %v4014_v3 = vor.u32 %v4471_v22, %v4011_v2 }
 0x149   :  { %v1905_v11 = vpop.f32.mrf.mxu2  ;;  %v1881_v21 = vpop.f32.mrf.mxu0 }
 0x14a   :  { %v1906_v14 = vadd.f32 %v1905_v11, %v1893_v8 }
 0x14b   :  { %2465 = vmatpush.bf16.msra.mxu3 %v4050_v6  ;;  %v1894_v23 = vpop.f32.mrf.mxu1 }
 0x14c   :  { %v1918_v15 = vpop.f32.mrf.mxu3 }
 0x14d   :  { %v1919_v17 = vadd.f32 %v1918_v15, %v1906_v14 }
 0x14f   :  { %2466 = vmatpush.bf16.msra.mxu3 %v4042_v12  ;;  %v2028_v13 = vmax.f32 %v1919_v17, 0.0 }
 0x151   :  { %v2032_v29 = vpack.c.bf16 %v2028_v13, %v2028_v13  ;;  %v1907_v30 = vpop.f32.mrf.mxu2  ;;  %v2098_v13 = vld [vmem:[%s6679_s4] sm:$0x3] }
 0x152   :  { %v2100_v27 = vperm.slane %v2098_v13, 0  ;;  %v2101_v32 = vperm.slane %v2098_v13, 1  ;;  %v2773_v13 = vlaneseq }
 0x153   :  { %2467 = vmatpush.bf16.msra.mxu3 %v4034_v25  ;;  %2458 = vmatmul.bf16.vlgmr.msra.gmra.mxu2 %v2032_v29 }
 0x154   :  { %v1920_v41 = vpop.f32.mrf.mxu3  ;;  %2760 = vmatpush.bf16.msra.mxu2 %v4510_v62 }
 0x157   :  { %2468 = vmatpush.bf16.msra.mxu3 %v4026_v24 }
 0x158   :  { %2761 = vmatpush.bf16.msra.mxu2 %v4509_v63 }
 0x15b   :  { %2469 = vmatpush.bf16.msra.mxu3 %v4018_v33 }
 0x15f   :  { %2470 = vmatpush.bf16.msra.mxu3 %v4010_v42 }
 0x161   :  { %v1931_v45 = vpop.f32.mrf.mxu0 }
 0x162   :  { %v1932_v20 = vadd.f32 %v1931_v45, %v297_v18  ;;  %v4501_v45 = vld [vmem:[%s6681_s5 + $0x70] sm:$0xff]  ;;  %v4496_v18 = vld [vmem:[%s6681_s5 + $0x48] sm:$0xff] }
 0x163   :  { %2515 = vmatpush.bf16.msrb.mxu3 %v4070_v36  ;;  %2510 = vmatmul.bf16.vlgmr.msrb.gmra.mxu2 %v2032_v29  ;;  %v1944_v47 = vpop.f32.mrf.mxu1  ;;  %v4494_v36 = vld [vmem:[%s6681_s5 + $0x38] sm:$0xff] }
 0x164   :  { %v1945_v40 = vadd.f32 %v1944_v47, %v1932_v20  ;;  %2664 = vmatpush.bf16.msra.mxu0 %v4494_v36  ;;  %2678 = vmatpush.bf16.msra.mxu1 %v4501_v45 }
 0x167   :  { %2516 = vmatpush.bf16.msrb.mxu3 %v4062_v46  ;;  %v4492_v46 = vld [vmem:[%s6681_s5 + $0x28] sm:$0xff] }
 0x168   :  { %2665 = vmatpush.bf16.msra.mxu0 %v4493_v39 }
 0x169   :  { %v1957_v51 = vpop.f32.mrf.mxu2  ;;  %v1933_v56 = vpop.f32.mrf.mxu0 }
 0x16a   :  { %v1958_v4 = vadd.f32 %v1957_v51, %v1945_v40  ;;  %v4489_v51 = vld [vmem:[%s6681_s5 + $0x10] sm:$0xff]  ;;  %v4500_v56 = vld [vmem:[%s6681_s5 + $0x68] sm:$0xff] }
 0x16b   :  { %2517 = vmatpush.bf16.msrb.mxu3 %v4054_v50  ;;  %v1946_v58 = vpop.f32.mrf.mxu1  ;;  %2679 = vmatpush.bf16.msra.mxu1 %v4500_v56 }
 0x16c   :  { %v1970_v53 = vpop.f32.mrf.mxu3  ;;  %2666 = vmatpush.bf16.msra.mxu0 %v4492_v46  ;;  %v4499_v58 = vld [vmem:[%s6681_s5 + $0x60] sm:$0xff] }
 0x16d   :  { %v1971_v5 = vadd.f32 %v1970_v53, %v1958_v4 }
 0x16f   :  { %2518 = vmatpush.bf16.msrb.mxu3 %v4046_v57  ;;  %v4487_v57 = vld [vmem:[%s6681_s5] sm:$0xff]  ;;  %2680 = vmatpush.bf16.msra.mxu1 %v4499_v58 }
 0x170   :  { %2667 = vmatpush.bf16.msra.mxu0 %v4491_v48 }
 0x171   :  { %v1959_v26 = vpop.f32.mrf.mxu2 }
 0x173   :  { %2519 = vmatpush.bf16.msrb.mxu3 %v4038_v61  ;;  %2681 = vmatpush.bf16.msra.mxu1 %v4498_v59  ;;  %v4495_v61 = vld [vmem:[%s6681_s5 + $0x40] sm:$0xff] }
 0x174   :  { %v1972_v0 = vpop.f32.mrf.mxu3  ;;  %2668 = vmatpush.bf16.msra.mxu0 %v4490_v49 }
 0x177   :  { %2520 = vmatpush.bf16.msrb.mxu3 %v4030_v1  ;;  %2682 = vmatpush.bf16.msra.mxu1 %v4497_v60 }
 0x178   :  { %2669 = vmatpush.bf16.msra.mxu0 %v4489_v51 }
 0x17b   :  { %2521 = vmatpush.bf16.msrb.mxu3 %v4022_v43  ;;  %2683 = vmatpush.bf16.msra.mxu1 %v4496_v18 }
 0x17c   :  { %2670 = vmatpush.bf16.msra.mxu0 %v4488_v55 }
 0x17f   :  { %2522 = vmatpush.bf16.msrb.mxu3 %v4014_v3  ;;  %2684 = vmatpush.bf16.msra.mxu1 %v4495_v61 }
 0x180   :  { %2671 = vmatpush.bf16.msra.mxu0 %v4487_v57 }
 0x181   :  { %v1983_v6 = vpop.f32.mrf.mxu0 }
 0x182   :  { %v1984_v9 = vadd.f32 %v1983_v6, %v1971_v5  ;;  %v4508_v5 = vld [vmem:[%s6682_s7 + $0x28] sm:$0xff]  ;;  %v4507_v6 = vld [vmem:[%s6682_s7 + $0x20] sm:$0xff] }
 0x183   :  { %v1996_v8 = vpop.f32.mrf.mxu1  ;;  %2762 = vmatpush.bf16.msra.mxu2 %v4508_v5 }
 0x184   :  { %v1997_v10 = vadd.f32 %v1996_v8, %v1984_v9  ;;  %v4506_v8 = vld [vmem:[%s6682_s7 + $0x18] sm:$0xff]  ;;  %v4505_v9 = vld [vmem:[%s6682_s7 + $0x10] sm:$0xff] }
 0x187   :  { %2763 = vmatpush.bf16.msra.mxu2 %v4507_v6 }
 0x189   :  { %v2009_v11 = vpop.f32.mrf.mxu2  ;;  %v1985_v15 = vpop.f32.mrf.mxu0 }
 0x18a   :  { %v2010_v12 = vadd.f32 %v2009_v11, %v1997_v10  ;;  %v2022_v14 = vpop.f32.mrf.mxu3  ;;  %v4504_v10 = vld [vmem:[%s6682_s7 + $0x8] sm:$0xff]  ;;  %v4503_v11 = vld [vmem:[%s6682_s7] sm:$0xff] }
 0x18b   :  { %v1998_v16 = vpop.f32.mrf.mxu1  ;;  %2764 = vmatpush.bf16.msra.mxu2 %v4506_v8  ;;  %v4511_v15 = vld [vmem:[%s6680_s6] ss:$0 sm:$0xff] }
 0x18c   :  { %v2023_v7 = vadd.f32 %v2022_v14, %v2010_v12 }
 0x18e   :  { %v2029_v17 = vmax.f32 %v2023_v7, 0.0 }
 0x18f   :  { %2765 = vmatpush.bf16.msra.mxu2 %v4505_v9 }
 0x190   :  { %v2033_v21 = vpack.c.bf16 %v2029_v17, %v2029_v17 }
 0x191   :  { %v2011_v23 = vpop.f32.mrf.mxu2 }
 0x192   :  { %v2024_v25 = vpop.f32.mrf.mxu3  ;;  %2471 = vmatmul.bf16.vlgmr.msra.gmra.mxu3 %v2033_v21 }
 0x193   :  { %2766 = vmatpush.bf16.msra.mxu2 %v4504_v10 }
 0x197   :  { %2767 = vmatpush.bf16.msra.mxu2 %v4503_v11 }
 0x1a1   :  { %v2433_v28 = vpop.f32.mrf.mxu0 }
 0x1a2   :  { %v2434_v29 = vadd.f32 %v2433_v28, %v2100_v27  ;;  %2523 = vmatmul.bf16.vlgmr.msrb.gmra.mxu3 %v2033_v21  ;;  %v2774_v27 = vand.u32 127, %v2773_v13  ;;  %v4512_v28 = vld [vmem:[%s6683_s8] ss:$0 sm:$0xff] }
 0x1a3   :  { %v2446_v30 = vpop.f32.mrf.mxu1 }
 0x1a4   :  { %v2447_v24 = vadd.f32 %v2446_v30, %v2434_v29  ;;  %vm2775_vm0 = vcmp.lt.s32.totalorder %v2774_v27, 10 }
 0x1a9   :  { %v2435_v41 = vpop.f32.mrf.mxu0 }
 0x1ab   :  { %v2448_v31 = vpop.f32.mrf.mxu1 }
 0x1c1   :  { %v2485_v33 = vpop.f32.mrf.mxu0 }
 0x1c2   :  { %v2486_v38 = vadd.f32 %v2485_v33, %v2101_v32 }
 0x1c3   :  { %v2498_v44 = vpop.f32.mrf.mxu1 }
 0x1c4   :  { %v2499_v42 = vadd.f32 %v2498_v44, %v2486_v38 }
 0x1c9   :  { %v2487_v35 = vpop.f32.mrf.mxu0 }
 0x1cb   :  { %v2500_v52 = vpop.f32.mrf.mxu1 }
 0x1d6   :  { %v2459_v47 = vpop.f32.mrf.mxu2 }
 0x1d7   :  { %v2460_v26 = vadd.f32 %v2459_v47, %v2447_v24 }
 0x1de   :  { %v2461_v50 = vpop.f32.mrf.mxu2 }
 0x1e6   :  { %v2511_v53 = vpop.f32.mrf.mxu2 }
 0x1e7   :  { %v2512_v43 = vadd.f32 %v2511_v53, %v2499_v42 }
 0x1ee   :  { %v2513_v54 = vpop.f32.mrf.mxu2 }
 0x215   :  { %v2472_v0 = vpop.f32.mrf.mxu3 }
 0x216   :  { %v2473_v1 = vadd.f32 %v2472_v0, %v2460_v26 }
 0x218   :  { %v2528_v19 = vmax.f32 %v2473_v1, 0.0 }
 0x21a   :  { %v2530_v34 = vpack.c.bf16 %v2528_v19, %v2528_v19 }
 0x21c   :  { %2672 = vmatmul.bf16.vlgmr.msra.gmra.mxu0 %v2530_v34 }
 0x21d   :  { %v2474_v20 = vpop.f32.mrf.mxu3 }
 0x225   :  { %v2524_v22 = vpop.f32.mrf.mxu3 }
 0x226   :  { %v2525_v2 = vadd.f32 %v2524_v22, %v2512_v43 }
 0x228   :  { %v2529_v40 = vmax.f32 %v2525_v2, 0.0 }
 0x22a   :  { %v2531_v3 = vpack.c.bf16 %v2529_v40, %v2529_v40 }
 0x22c   :  { %2685 = vmatmul.bf16.vlgmr.msra.gmra.mxu1 %v2531_v3 }
 0x22d   :  { %v2526_v4 = vpop.f32.mrf.mxu3 }
 0x299   :  { %v2673_v12 = vpop.f32.mrf.mxu0 }
 0x29a   :  { %v2674_v16 = vadd.f32 %v4511_v15, %v2673_v12 }
 0x2a1   :  { %v2675_v14 = vpop.f32.mrf.mxu0 }
 0x2a9   :  { %v2686_v7 = vpop.f32.mrf.mxu1 }
 0x2aa   :  { %v2687_v17 = vadd.f32 %v2686_v7, %v2674_v16 }
 0x2ac   :  { %v2690_v21 = vmax.f32 %v2687_v17, 0.0 }
 0x2ae   :  { %v2691_v23 = vpack.c.bf16 %v2690_v21, %v2690_v21 }
 0x2b0   :  { %2768 = vmatmul.bf16.vlgmr.msra.gmra.mxu2 %v2691_v23 }
 0x2b1   :  { %v2688_v25 = vpop.f32.mrf.mxu1 }
 0x333   :  { %v2769_v29 = vpop.f32.mrf.mxu2 }
 0x334   :  { %v2770_v30 = vadd.f32 %v4512_v28, %v2769_v29 }
 0x336   :  { %v2776_v24 = vsel %vm2775_vm0, %v2770_v30, -inf }
 0x337   :  { %2777 = vmax.xlane.f32.xlu0 %v2776_v24 }
 0x33b   :  { %v2771_v41 = vpop.f32.mrf.mxu2 }
 0x3aa   :  { %v2778_v31 = vpop.xlane.xlu0 %2777 }
 0x3ab   :  { %v2779_v32 = vsub.f32 %v2776_v24, %v2778_v31 }
 0x3ad   :  { %v2780_v33 = vmul.f32 1.442695, %v2779_v32 }
 0x3af   :  { %4513 = vpow2.f32 %v2780_v33 }
 0x3b5   :  { %v4514_v38 = vpop.eup %4513 }
 0x3b6   :  { %2782 = vadd.xlane.f32.xlu0 %v4514_v38 }
 0x429   :  { %v2783_v44 = vpop.xlane.xlu0 %2782 }
 0x42a   :  { %4515 = vrcp.f32 %v2783_v44 }
 0x430   :  { %v4516_v42 = vpop.eup %4515 }
 0x431   :  { %v2785_v35 = vmul.f32 %v4516_v42, %v4514_v38 }
 0x433   :  { %2786 = vst [vmem:[%s6684_s9] sm:$0xff] %v2785_v35 }

</bundles_post_ra>
